<compile_context>
chip_gen: v5e
topology: v5e:2x2
jax: 0.10.0
libtpu: 0.0.40
codegen_flags: <defaults>
</compile_context>

<pallas_src>
import jax
import jax.numpy as jnp
from jax.experimental import pallas as pl
from jax.experimental.pallas import tpu as pltpu

HIDDEN = 254
IN_DIM = 4
OUT_DIM = 2

# Padded (kernel-internal) sizes.
HID_PAD = 256
W1_ROWS = 8      # layer-1 weight rows padded to the f32 sublane minimum
W3T_ROWS = 8     # transposed layer-3 weight rows (classes) padded to 8

MAX_TILE_B = 512


def _choose_tile_b(B):
    """Pick the batch tile (multiple of 128, <= MAX_TILE_B).

    Goals (perf review): few grid steps (~0.35 us fixed cost each) and, when
    B > 128, an even number of tiles so v7x's two TensorCores split the batch
    evenly (harmless on single-core v5e/v6e).
    """
    if B <= 128:
        return 128
    best_t, best_key = None, None
    for t in (512, 384, 256, 128):
        nb = -(-B // t)                      # cdiv
        waste = nb * t - B
        key = (0 if nb % 2 == 0 else 1, nb, waste)
        if best_key is None or key < best_key:
            best_key, best_t = key, t
    return best_t


def _policy_kernel(x_ref, w1_ref, b1_ref, w2_ref, b2_ref, w3t_ref, b3_ref, o_ref):
    x = x_ref[...]            # (TILE_B, IN_DIM)   f32
    w1 = w1_ref[...]          # (W1_ROWS, HID_PAD) f32

    # Layer 1: Linear(4 -> 254) + ReLU as 4 broadcast-FMA columns (pure VPU,
    # exact f32; K=4 is not worth an MXU pass).
    acc = x[:, 0:1] * w1[0:1, :]
    for k in range(1, IN_DIM):
        acc = acc + x[:, k:k + 1] * w1[k:k + 1, :]
    h1 = jnp.maximum(acc + b1_ref[...], 0.0)

    # Layer 2: Linear(254 -> 254) + ReLU.  bf16 MXU inputs, f32 accumulation.
    h2 = jnp.dot(h1.astype(jnp.bfloat16), w2_ref[...],
                 preferred_element_type=jnp.float32)
    h2 = jnp.maximum(h2 + b2_ref[...], 0.0)

    # Layer 3, transposed orientation: logits_T[c, b] = sum_k w3_T[c, k] h2[b, k].
    # Keeps the kernel output lane-dense (last dim = TILE_B) instead of a
    # 128-lane-padded 2-class output.
    logits_t = jax.lax.dot_general(
        w3t_ref[...], h2.astype(jnp.bfloat16),
        dimension_numbers=(((1,), (1,)), ((), ())),
        preferred_element_type=jnp.float32)              # (W3T_ROWS, TILE_B)

    l0 = logits_t[0:1, :] + b3_ref[0:1, :]               # (1, TILE_B)
    l1 = logits_t[1:2, :] + b3_ref[1:2, :]               # (1, TILE_B)

    # 2-class softmax, purely elementwise on two sublane rows.
    m = jnp.maximum(l0, l1)
    e0 = jnp.exp(l0 - m)
    e1 = jnp.exp(l1 - m)
    inv = pl.reciprocal(e0 + e1, approx=False)           # exact: keeps sum==1 at 1e-5
    o_ref[0:1, :] = e0 * inv
    o_ref[1:2, :] = e1 * inv


def pad_params(params):
    """Pad/cast parameters ONCE (hoisted out of the per-call path).

    w1 stays f32 (8x256 = 8 KiB); w2/w3 are stored bf16 to halve weight DMA.
    The layer-3 weight is stored TRANSPOSED as (class, k); padded classes 2..7
    are zero and never read by the in-kernel 2-class softmax.  b3 stays f32.
    """
    w1, b1, w2, b2, w3, b3 = params
    w1_p = jnp.zeros((W1_ROWS, HID_PAD), jnp.float32).at[:IN_DIM, :HIDDEN].set(w1)
    b1_p = jnp.zeros((1, HID_PAD), jnp.float32).at[:, :HIDDEN].set(b1[None, :])
    w2_p = (jnp.zeros((HID_PAD, HID_PAD), jnp.bfloat16)
            .at[:HIDDEN, :HIDDEN].set(w2.astype(jnp.bfloat16)))
    b2_p = jnp.zeros((1, HID_PAD), jnp.float32).at[:, :HIDDEN].set(b2[None, :])
    w3t_p = (jnp.zeros((W3T_ROWS, HID_PAD), jnp.bfloat16)
             .at[:OUT_DIM, :HIDDEN].set(w3.T.astype(jnp.bfloat16)))
    b3_p = b3.astype(jnp.float32).reshape(OUT_DIM, 1)
    return (w1_p, b1_p, w2_p, b2_p, w3t_p, b3_p)


@jax.jit
def policy_net_forward(x, padded_params):
    """x: [B, 4] float32 -> probs: [B, 2] float32.  `padded_params` from pad_params()."""
    w1_p, b1_p, w2_p, b2_p, w3t_p, b3_p = padded_params
    B = x.shape[0]
    tile_b = _choose_tile_b(B)
    nb = -(-B // tile_b)                      # cdiv
    B_pad = nb * tile_b

    # Raw (B, 4) goes straight in; only row padding remains (and only if needed).
    x_in = x if B_pad == B else jnp.pad(x, ((0, B_pad - B), (0, 0)))

    const = lambda shape: pl.BlockSpec(shape, lambda i: (0, 0))  # VMEM-resident weights

    out_t = pl.pallas_call(
        _policy_kernel,
        out_shape=jax.ShapeDtypeStruct((OUT_DIM, B_pad), jnp.float32),
        grid=(nb,),
        in_specs=[
            pl.BlockSpec((tile_b, IN_DIM), lambda i: (i, 0)),
            const((W1_ROWS, HID_PAD)),
            const((1, HID_PAD)),
            const((HID_PAD, HID_PAD)),
            const((1, HID_PAD)),
            const((W3T_ROWS, HID_PAD)),
            const((OUT_DIM, 1)),
        ],
        out_specs=pl.BlockSpec((OUT_DIM, tile_b), lambda i: (0, i)),
        compiler_params=pltpu.CompilerParams(
            dimension_semantics=("parallel",)),   # v7x: split batch tiles across 2 TCs
    )(x_in, w1_p, b1_p, w2_p, b2_p, w3t_p, b3_p)

    # (2, B_pad) lane-dense kernel output -> (B, 2)
    return out_t[:, :B].T


def init_params(key):
    """Deterministic init mimicking PyTorch's default Linear init:
    U(-1/sqrt(fan_in), 1/sqrt(fan_in)) for both weight and bias."""
    ks = jax.random.split(key, 6)

    def lin(kw, kb, fan_in, fan_out):
        bound = 1.0 / jnp.sqrt(float(fan_in))
        w = jax.random.uniform(kw, (fan_in, fan_out), jnp.float32, -bound, bound)
        b = jax.random.uniform(kb, (fan_out,), jnp.float32, -bound, bound)
        return w, b

    w1, b1 = lin(ks[0], ks[1], IN_DIM, HIDDEN)
    w2, b2 = lin(ks[2], ks[3], HIDDEN, HIDDEN)
    w3, b3 = lin(ks[4], ks[5], HIDDEN, OUT_DIM)
    return (w1, b1, w2, b2, w3, b3)


def reference_forward(x, params):
    """Pure-JAX full-f32 reference of the PyTorch forward."""
    w1, b1, w2, b2, w3, b3 = params
    hp = jax.lax.Precision.HIGHEST
    h = jnp.maximum(jnp.dot(x, w1, precision=hp) + b1, 0.0)
    h = jnp.maximum(jnp.dot(h, w2, precision=hp) + b2, 0.0)
    logits = jnp.dot(h, w3, precision=hp) + b3
    return jax.nn.softmax(logits, axis=-1)


def reference_forward_bf16(x, params):
    """Reference mirroring the kernel's precision (f32 layer 1, bf16 inputs with
    f32 accumulation for layers 2/3)."""
    w1, b1, w2, b2, w3, b3 = params
    hp = jax.lax.Precision.HIGHEST
    h1 = jnp.maximum(jnp.dot(x, w1, precision=hp) + b1, 0.0)
    h2 = jnp.dot(h1.astype(jnp.bfloat16), w2.astype(jnp.bfloat16),
                 preferred_element_type=jnp.float32)
    h2 = jnp.maximum(h2 + b2, 0.0)
    logits = jnp.dot(h2.astype(jnp.bfloat16), w3.astype(jnp.bfloat16),
                     preferred_element_type=jnp.float32) + b3
    return jax.nn.softmax(logits, axis=-1)


if __name__ == "__main__":
    key = jax.random.PRNGKey(0)
    k_x, k_p = jax.random.split(key)

    params = init_params(k_p)
    padded_params = pad_params(params)   # done once, outside the per-call path

    # B=5: small-shape smoke test (single 128-row tile, row padding path).
    # B=300: multi-tile case; chooser picks TILE_B=256 -> 2 tiles (even count
    # so v7x's two TensorCores split evenly) and exercises the [:B] slice.
    for B in (5, 300):
        x = jax.random.normal(jax.random.fold_in(k_x, B), (B, IN_DIM), jnp.float32)
        probs = jax.block_until_ready(policy_net_forward(x, padded_params))

        assert probs.shape == (B, OUT_DIM)
        # Tight check against a reference with the kernel's mixed precision.
        ref_bf16 = reference_forward_bf16(x, params)
        assert jnp.allclose(probs, ref_bf16, atol=1e-3, rtol=1e-3), (
            B, float(jnp.max(jnp.abs(probs - ref_bf16))))
        # Looser sanity check against the full-f32 reference (bf16 weight rounding).
        ref_f32 = reference_forward(x, params)
        assert jnp.allclose(probs, ref_f32, atol=2e-2, rtol=2e-2), (
            B, float(jnp.max(jnp.abs(probs - ref_f32))))
        assert jnp.allclose(jnp.sum(probs, axis=-1), 1.0, atol=1e-5)

    print("KERNEL_OK")
</pallas_src>

<mosaic_0001>
module attributes {stable_mosaic.version = 11 : i64} {
  func.func @_policy_kernel(%arg0: i32, %arg1: memref<128x4xf32, #tpu.memory_space<vmem>>, %arg2: memref<8x256xf32, #tpu.memory_space<vmem>>, %arg3: memref<1x256xf32, #tpu.memory_space<vmem>>, %arg4: memref<256x256xbf16, #tpu.memory_space<vmem>>, %arg5: memref<1x256xf32, #tpu.memory_space<vmem>>, %arg6: memref<8x256xbf16, #tpu.memory_space<vmem>>, %arg7: memref<2x1xf32, #tpu.memory_space<vmem>>, %arg8: memref<2x128xf32, #tpu.memory_space<vmem>>) attributes {dimension_semantics = [#tpu.dimension_semantics<parallel>], iteration_bounds = array<i64: 1>, scalar_prefetch = 0 : i64, scratch_operands = 0 : i64, tpu.core_type = #tpu.core_type<tc>, window_params = [{transform_indices = @transform_0, window_bounds = array<i64: 128, 4>}, {pipeline_mode = #tpu.pipeline_mode<synchronous>, transform_indices = @transform_1, window_bounds = array<i64: 8, 256>}, {pipeline_mode = #tpu.pipeline_mode<synchronous>, transform_indices = @transform_2, window_bounds = array<i64: 1, 256>}, {pipeline_mode = #tpu.pipeline_mode<synchronous>, transform_indices = @transform_3, window_bounds = array<i64: 256, 256>}, {pipeline_mode = #tpu.pipeline_mode<synchronous>, transform_indices = @transform_4, window_bounds = array<i64: 1, 256>}, {pipeline_mode = #tpu.pipeline_mode<synchronous>, transform_indices = @transform_5, window_bounds = array<i64: 8, 256>}, {pipeline_mode = #tpu.pipeline_mode<synchronous>, transform_indices = @transform_6, window_bounds = array<i64: 2, 1>}, {transform_indices = @transform_7, window_bounds = array<i64: 2, 128>}]} {
    %c0 = arith.constant 0 : index
    %c0_0 = arith.constant 0 : index
    %0 = vector.load %arg1[%c0, %c0_0] : memref<128x4xf32, #tpu.memory_space<vmem>>, vector<128x4xf32>
    %c0_1 = arith.constant 0 : index
    %c0_2 = arith.constant 0 : index
    %1 = vector.load %arg2[%c0_1, %c0_2] : memref<8x256xf32, #tpu.memory_space<vmem>>, vector<8x256xf32>
    %2 = vector.extract_strided_slice %0 {offsets = [0, 0], sizes = [128, 1], strides = [1, 1]} : vector<128x4xf32> to vector<128x1xf32>
    %3 = vector.extract_strided_slice %1 {offsets = [0, 0], sizes = [1, 256], strides = [1, 1]} : vector<8x256xf32> to vector<1x256xf32>
    %4 = vector.broadcast %2 : vector<128x1xf32> to vector<128x256xf32>
    %5 = vector.broadcast %3 : vector<1x256xf32> to vector<128x256xf32>
    %6 = arith.mulf %4, %5 : vector<128x256xf32>
    %7 = vector.extract_strided_slice %0 {offsets = [0, 1], sizes = [128, 1], strides = [1, 1]} : vector<128x4xf32> to vector<128x1xf32>
    %8 = vector.extract_strided_slice %1 {offsets = [1, 0], sizes = [1, 256], strides = [1, 1]} : vector<8x256xf32> to vector<1x256xf32>
    %9 = vector.broadcast %7 : vector<128x1xf32> to vector<128x256xf32>
    %10 = vector.broadcast %8 : vector<1x256xf32> to vector<128x256xf32>
    %11 = arith.mulf %9, %10 : vector<128x256xf32>
    %12 = arith.addf %6, %11 : vector<128x256xf32>
    %13 = vector.extract_strided_slice %0 {offsets = [0, 2], sizes = [128, 1], strides = [1, 1]} : vector<128x4xf32> to vector<128x1xf32>
    %14 = vector.extract_strided_slice %1 {offsets = [2, 0], sizes = [1, 256], strides = [1, 1]} : vector<8x256xf32> to vector<1x256xf32>
    %15 = vector.broadcast %13 : vector<128x1xf32> to vector<128x256xf32>
    %16 = vector.broadcast %14 : vector<1x256xf32> to vector<128x256xf32>
    %17 = arith.mulf %15, %16 : vector<128x256xf32>
    %18 = arith.addf %12, %17 : vector<128x256xf32>
    %19 = vector.extract_strided_slice %0 {offsets = [0, 3], sizes = [128, 1], strides = [1, 1]} : vector<128x4xf32> to vector<128x1xf32>
    %20 = vector.extract_strided_slice %1 {offsets = [3, 0], sizes = [1, 256], strides = [1, 1]} : vector<8x256xf32> to vector<1x256xf32>
    %21 = vector.broadcast %19 : vector<128x1xf32> to vector<128x256xf32>
    %22 = vector.broadcast %20 : vector<1x256xf32> to vector<128x256xf32>
    %23 = arith.mulf %21, %22 : vector<128x256xf32>
    %24 = arith.addf %18, %23 : vector<128x256xf32>
    %c0_3 = arith.constant 0 : index
    %c0_4 = arith.constant 0 : index
    %25 = vector.load %arg3[%c0_3, %c0_4] : memref<1x256xf32, #tpu.memory_space<vmem>>, vector<1x256xf32>
    %26 = vector.broadcast %25 : vector<1x256xf32> to vector<128x256xf32>
    %27 = arith.addf %24, %26 : vector<128x256xf32>
    %cst = arith.constant 0.000000e+00 : f32
    %28 = vector.broadcast %cst : f32 to vector<128x256xf32>
    %29 = arith.maximumf %27, %28 : vector<128x256xf32>
    %30 = arith.truncf %29 : vector<128x256xf32> to vector<128x256xbf16>
    %c0_5 = arith.constant 0 : index
    %c0_6 = arith.constant 0 : index
    %31 = vector.load %arg4[%c0_5, %c0_6] : memref<256x256xbf16, #tpu.memory_space<vmem>>, vector<256x256xbf16>
    %cst_7 = arith.constant dense<0.000000e+00> : vector<128x256xf32>
    %32 = tpu.matmul %30, %31, %cst_7 {dimension_numbers = #tpu.dot_dimension_numbers<[1], [0], [0], [1], [0, 0, 1, 1], [], []>} : vector<128x256xbf16>, vector<256x256xbf16>, vector<128x256xf32> -> vector<128x256xf32>
    %c0_8 = arith.constant 0 : index
    %c0_9 = arith.constant 0 : index
    %33 = vector.load %arg5[%c0_8, %c0_9] : memref<1x256xf32, #tpu.memory_space<vmem>>, vector<1x256xf32>
    %34 = vector.broadcast %33 : vector<1x256xf32> to vector<128x256xf32>
    %35 = arith.addf %32, %34 : vector<128x256xf32>
    %cst_10 = arith.constant 0.000000e+00 : f32
    %36 = vector.broadcast %cst_10 : f32 to vector<128x256xf32>
    %37 = arith.maximumf %35, %36 : vector<128x256xf32>
    %c0_11 = arith.constant 0 : index
    %c0_12 = arith.constant 0 : index
    %38 = vector.load %arg6[%c0_11, %c0_12] : memref<8x256xbf16, #tpu.memory_space<vmem>>, vector<8x256xbf16>
    %39 = arith.truncf %37 : vector<128x256xf32> to vector<128x256xbf16>
    %cst_13 = arith.constant dense<0.000000e+00> : vector<8x128xf32>
    %40 = tpu.matmul %38, %39, %cst_13 {dimension_numbers = #tpu.dot_dimension_numbers<[1], [1], [0], [0], [0, 0, 1, 0], [], []>} : vector<8x256xbf16>, vector<128x256xbf16>, vector<8x128xf32> -> vector<8x128xf32>
    %41 = vector.extract_strided_slice %40 {offsets = [0, 0], sizes = [1, 128], strides = [1, 1]} : vector<8x128xf32> to vector<1x128xf32>
    %c0_14 = arith.constant 0 : index
    %c0_15 = arith.constant 0 : index
    %42 = vector.load %arg7[%c0_14, %c0_15] : memref<2x1xf32, #tpu.memory_space<vmem>>, vector<1x1xf32>
    %43 = vector.broadcast %42 : vector<1x1xf32> to vector<1x128xf32>
    %44 = arith.addf %41, %43 : vector<1x128xf32>
    %45 = vector.extract_strided_slice %40 {offsets = [1, 0], sizes = [1, 128], strides = [1, 1]} : vector<8x128xf32> to vector<1x128xf32>
    %c1 = arith.constant 1 : index
    %c0_16 = arith.constant 0 : index
    %46 = vector.load %arg7[%c1, %c0_16] : memref<2x1xf32, #tpu.memory_space<vmem>>, vector<1x1xf32>
    %47 = vector.broadcast %46 : vector<1x1xf32> to vector<1x128xf32>
    %48 = arith.addf %45, %47 : vector<1x128xf32>
    %49 = arith.maximumf %44, %48 : vector<1x128xf32>
    %50 = arith.subf %44, %49 : vector<1x128xf32>
    %51 = math.exp %50 : vector<1x128xf32>
    %52 = arith.subf %48, %49 : vector<1x128xf32>
    %53 = math.exp %52 : vector<1x128xf32>
    %54 = arith.addf %51, %53 : vector<1x128xf32>
    %55 = tpu.reciprocal %54 : vector<1x128xf32> -> vector<1x128xf32>
    %56 = arith.mulf %51, %55 : vector<1x128xf32>
    %c0_17 = arith.constant 0 : index
    %c0_18 = arith.constant 0 : index
    %57 = vector.load %arg8[%c0_17, %c0_18] : memref<2x128xf32, #tpu.memory_space<vmem>>, vector<1x128xf32>
    tpu.vector_store %arg8[%c0_17, %c0_18], %56 {strides = array<i32>} : memref<2x128xf32, #tpu.memory_space<vmem>>, vector<1x128xf32>,
    %58 = arith.mulf %53, %55 : vector<1x128xf32>
    %c1_19 = arith.constant 1 : index
    %c0_20 = arith.constant 0 : index
    %59 = vector.load %arg8[%c1_19, %c0_20] : memref<2x128xf32, #tpu.memory_space<vmem>>, vector<1x128xf32>
    tpu.vector_store %arg8[%c1_19, %c0_20], %58 {strides = array<i32>} : memref<2x128xf32, #tpu.memory_space<vmem>>, vector<1x128xf32>,
    return
  }
  func.func @transform_0(%arg0: i32) -> (i32, i32) {
    %c0_i32 = arith.constant 0 : i32
    %c0_i32_0 = arith.constant 0 : i32
    return %arg0, %c0_i32 : i32, i32
  }
  func.func @transform_1(%arg0: i32) -> (i32, i32) {
    %c0_i32 = arith.constant 0 : i32
    %c0_i32_0 = arith.constant 0 : i32
    %c0_i32_1 = arith.constant 0 : i32
    return %c0_i32, %c0_i32_0 : i32, i32
  }
  func.func @transform_2(%arg0: i32) -> (i32, i32) {
    %c0_i32 = arith.constant 0 : i32
    %c0_i32_0 = arith.constant 0 : i32
    %c0_i32_1 = arith.constant 0 : i32
    return %c0_i32, %c0_i32_0 : i32, i32
  }
  func.func @transform_3(%arg0: i32) -> (i32, i32) {
    %c0_i32 = arith.constant 0 : i32
    %c0_i32_0 = arith.constant 0 : i32
    %c0_i32_1 = arith.constant 0 : i32
    return %c0_i32, %c0_i32_0 : i32, i32
  }
  func.func @transform_4(%arg0: i32) -> (i32, i32) {
    %c0_i32 = arith.constant 0 : i32
    %c0_i32_0 = arith.constant 0 : i32
    %c0_i32_1 = arith.constant 0 : i32
    return %c0_i32, %c0_i32_0 : i32, i32
  }
  func.func @transform_5(%arg0: i32) -> (i32, i32) {
    %c0_i32 = arith.constant 0 : i32
    %c0_i32_0 = arith.constant 0 : i32
    %c0_i32_1 = arith.constant 0 : i32
    return %c0_i32, %c0_i32_0 : i32, i32
  }
  func.func @transform_6(%arg0: i32) -> (i32, i32) {
    %c0_i32 = arith.constant 0 : i32
    %c0_i32_0 = arith.constant 0 : i32
    %c0_i32_1 = arith.constant 0 : i32
    return %c0_i32, %c0_i32_0 : i32, i32
  }
  func.func @transform_7(%arg0: i32) -> (i32, i32) {
    %c0_i32 = arith.constant 0 : i32
    %c0_i32_0 = arith.constant 0 : i32
    return %c0_i32, %arg0 : i32, i32
  }
}

</mosaic_0001>

<bundles_post_ra>
// kernel: policy_net_forward.1
= control target key start
LH: loop header
LB: loop body
LE: loop exit
PB: predicated region body
PF: predicated region fallthrough
CT: control target
= control target key end

     0   :  { %12 = vsyncpa [#allocation3], 0  ;;  %s1443_s27 = smov [#allocation2]   ;;  %s1444_s29 = smov 128   ;;  %s1990_s0 = inlined_call_operand.vmem [shape: f32[128,4], index: 0, kind: input, shape index: {}]   ;;  %s1991_s1 = inlined_call_operand.vmem [shape: f32[8,256], index: 1, kind: input, shape index: {}]   ;;  %s1992_s2 = inlined_call_operand.vmem [shape: f32[1,256], index: 2, kind: input, shape index: {}]   ;;  %s1993_s3 = inlined_call_operand.hbm [shape: bf16[256,256], index: 3, kind: input, shape index: {}]   ;;  %s1994_s4 = inlined_call_operand.vmem [shape: f32[1,256], index: 4, kind: input, shape index: {}]   ;;  %s1995_s5 = inlined_call_operand.vmem [shape: bf16[8,256], index: 5, kind: input, shape index: {}]   ;;  %s1996_s6 = inlined_call_operand.vmem [shape: f32[2,1], index: 6, kind: input, shape index: {}]   ;;  %s1997_s7 = inlined_call_operand.vmem [shape: f32[2,128], index: 7, kind: output, shape index: {}]  }
   0x1   :  { %s23_s26 = sshll.u32 %s1993_s3, 4  ;;  %s25_s28 = sshll.u32 %s1443_s27, 4  ;;  %s24_s26 = int_to_ptr.hbm [resolvable:$true] %s23_s26  ;;  %s26_s28 = int_to_ptr.vmem [resolvable:$true] %s25_s28 }
   0x2   :  { %s1445_s30 = smov 8  }
   0x3   :  { %31 = dma.hbm_to_vmem [thread:$0]  %s24_s26, 4096, %s26_s28, [#allocation3], %s1444_s29, %s1444_s29, %s1445_s30  }
   0x4   :  { %1441 = dma.done.wait [#allocation3], 4096  }
   0x5   :  { %1442 = vsyncadd [#allocation3], 4294963200  ;;  %v1446_v0 = vmov 1   ;;  %v1447_v1 = vmov 0   ;;  %v1448_v2 = vmov 2   ;;  %v42_v3 = vld [vmem:[%s1990_s0] sm:$0xff] }
   0x6   :  { %1352 = vset.pattern.permute.xlu1 %v1446_v0  ;;  %1351 = vset.pattern.permute.xlu0 %v1447_v1  ;;  %v43_v4 = vld [vmem:[%s1990_s0 + $0x8] sm:$0xff]  ;;  %v46_v5 = vld [vmem:[%s1990_s0 + $0x20] sm:$0xff]  ;;  %v44_v6 = vld [vmem:[%s1990_s0 + $0x10] sm:$0xff]  ;;  %v1449_v7 = vmov 3  }
   0x7   :  { %1353 = vset.pattern.permute.xlu2 %v1448_v2  ;;  %175 = vperm.xlu1 %1352, %v42_v3   ;;  %v45_v8 = vld [vmem:[%s1990_s0 + $0x18] sm:$0xff]  ;;  %v48_v9 = vld [vmem:[%s1990_s0 + $0x30] sm:$0xff]  ;;  %v47_v11 = vld [vmem:[%s1990_s0 + $0x28] sm:$0xff] }
   0x8   :  { %62 = vperm.xlu0 %1351, %v42_v3   ;;  %305 = vperm.xlu2 %1353, %v42_v3   ;;  %v49_v10 = vld [vmem:[%s1990_s0 + $0x38] sm:$0xff]  ;;  %v1540_v12 = vld [vmem:[%s1990_s0 + $0x40] sm:$0xff]  ;;  %v1242_v15 = vld [vmem:[#allocation2 + $0x70] sm:$0xf] }
   0x9   :  { %v1327_v16 = vld [vmem:[#allocation2 + $0x74] sm:$0xf0]  ;;  %v1306_v17 = vld [vmem:[#allocation2 + $0xf0] sm:$0xf]  ;;  %v1326_v20 = vld [vmem:[#allocation2 + $0x74] sm:$0xf] }
   0xa   :  { %v1243_v18 = vor.u32 %v1327_v16, %v1242_v15  ;;  %v1343_v19 = vld [vmem:[#allocation2 + $0xf4] sm:$0xf0]  ;;  %v1244_v21 = vld [vmem:[#allocation2 + $0x78] sm:$0xf0]  ;;  %v1557_v22 = vld [vmem:[%s1990_s0 + $0x48] sm:$0xff] }
   0xb   :  { %v1307_v23 = vor.u32 %v1343_v19, %v1306_v17  ;;  %v1247_v24 = vor.u32 %v1326_v20, %v1244_v21  ;;  %v1342_v25 = vld [vmem:[#allocation2 + $0xf4] sm:$0xf]  ;;  %v1308_v26 = vld [vmem:[#allocation2 + $0xf8] sm:$0xf0]  ;;  %v1234_v27 = vld [vmem:[#allocation2 + $0x60] sm:$0xf] }
   0xc   :  { %848 = vmatpush.bf16.msra.mxu0 %v1243_v18  ;;  %v1311_v28 = vor.u32 %v1342_v25, %v1308_v26  ;;  %v1325_v29 = vld [vmem:[#allocation2 + $0x64] sm:$0xf0]  ;;  %v1298_v30 = vld [vmem:[#allocation2 + $0xe0] sm:$0xf]  ;;  %v1324_v34 = vld [vmem:[#allocation2 + $0x64] sm:$0xf] }
   0xd   :  { %v1341_v31 = vld [vmem:[#allocation2 + $0xe4] sm:$0xf0]  ;;  %897 = vmatpush.bf16.msra.mxu1 %v1307_v23  ;;  %946 = vmatpush.bf16.msra.mxu2 %v1247_v24  ;;  %v1235_v32 = vor.u32 %v1325_v29, %v1234_v27  ;;  %v1236_v35 = vld [vmem:[#allocation2 + $0x68] sm:$0xf0]  ;;  %v1340_v36 = vld [vmem:[#allocation2 + $0xe4] sm:$0xf] }
   0xe   :  { %v1299_v33 = vor.u32 %v1341_v31, %v1298_v30  ;;  %995 = vmatpush.bf16.msra.mxu3 %v1311_v28  ;;  %v1239_v37 = vor.u32 %v1324_v34, %v1236_v35  ;;  %v1300_v38 = vld [vmem:[#allocation2 + $0xe8] sm:$0xf0]  ;;  %v1226_v41 = vld [vmem:[#allocation2 + $0x50] sm:$0xf]  ;;  %v1323_v42 = vld [vmem:[#allocation2 + $0x54] sm:$0xf0] }
   0xf   :  { %179 = vperm.xlu1 %1352, %v43_v4   ;;  %v1303_v39 = vor.u32 %v1340_v36, %v1300_v38  ;;  %v1290_v43 = vld [vmem:[#allocation2 + $0xd0] sm:$0xf]  ;;  %v1568_v44 = vld [vmem:[%s1990_s0 + $0x58] sm:$0xff]  ;;  %v1227_v45 = vor.u32 %v1323_v42, %v1226_v41  ;;  %v1322_v48 = vld [vmem:[#allocation2 + $0x54] sm:$0xf] }
  0x10   :  { %67 = vperm.xlu0 %1351, %v43_v4   ;;  %309 = vperm.xlu2 %1353, %v43_v4   ;;  %v1339_v46 = vld [vmem:[#allocation2 + $0xd4] sm:$0xf0]  ;;  %v1228_v49 = vld [vmem:[#allocation2 + $0x58] sm:$0xf0]  ;;  %v1338_v50 = vld [vmem:[#allocation2 + $0xd4] sm:$0xf] }
  0x11   :  { %849 = vmatpush.bf16.msra.mxu0 %v1235_v32  ;;  %898 = vmatpush.bf16.msra.mxu1 %v1299_v33  ;;  %v1291_v47 = vor.u32 %v1339_v46, %v1290_v43  ;;  %v1231_v51 = vor.u32 %v1322_v48, %v1228_v49  ;;  %v1292_v52 = vld [vmem:[#allocation2 + $0xd8] sm:$0xf0]  ;;  %v1218_v54 = vld [vmem:[#allocation2 + $0x40] sm:$0xf]  ;;  %v1321_v55 = vld [vmem:[#allocation2 + $0x44] sm:$0xf0] }
  0x12   :  { %947 = vmatpush.bf16.msra.mxu2 %v1239_v37  ;;  %996 = vmatpush.bf16.msra.mxu3 %v1303_v39  ;;  %v1295_v53 = vor.u32 %v1338_v50, %v1292_v52  ;;  %v1282_v56 = vld [vmem:[#allocation2 + $0xc0] sm:$0xf]  ;;  %v1219_v59 = vor.u32 %v1321_v55, %v1218_v54  ;;  %v1337_v60 = vld [vmem:[#allocation2 + $0xc4] sm:$0xf0]  ;;  %v1320_v61 = vld [vmem:[#allocation2 + $0x44] sm:$0xf] }
  0x13   :  { %v1220_v62 = vld [vmem:[#allocation2 + $0x48] sm:$0xf0]  ;;  %v1336_v63 = vld [vmem:[#allocation2 + $0xc4] sm:$0xf]  ;;  %v1335_v15 = vld [vmem:[#allocation2 + $0xb4] sm:$0xf0] }
  0x14   :  { %v1318_v16 = vld [vmem:[#allocation2 + $0x34] sm:$0xf]  ;;  %v1212_v17 = vld [vmem:[#allocation2 + $0x38] sm:$0xf0]  ;;  %v1202_v25 = vld [vmem:[#allocation2 + $0x20] sm:$0xf] }
  0x15   :  { %850 = vmatpush.bf16.msra.mxu0 %v1227_v45  ;;  %899 = vmatpush.bf16.msra.mxu1 %v1291_v47  ;;  %v1584_v19 = vld [vmem:[%s1990_s0 + $0x50] sm:$0xff]  ;;  %v1215_v21 = vor.u32 %v1318_v16, %v1212_v17  ;;  %v1276_v24 = vld [vmem:[#allocation2 + $0xb8] sm:$0xf0]  ;;  %v1317_v26 = vld [vmem:[#allocation2 + $0x24] sm:$0xf0] }
  0x16   :  { %948 = vmatpush.bf16.msra.mxu2 %v1231_v51  ;;  %997 = vmatpush.bf16.msra.mxu3 %v1295_v53  ;;  %v1334_v23 = vld [vmem:[#allocation2 + $0xb4] sm:$0xf]  ;;  %v1266_v27 = vld [vmem:[#allocation2 + $0xa0] sm:$0xf]  ;;  %v1333_v28 = vld [vmem:[#allocation2 + $0xa4] sm:$0xf0]  ;;  %v1203_v34 = vor.u32 %v1317_v26, %v1202_v25 }
  0x17   :  { %1354 = vset.pattern.permute.xlu1 %v1449_v7  ;;  %v1316_v29 = vld [vmem:[#allocation2 + $0x24] sm:$0xf]  ;;  %v1204_v30 = vld [vmem:[#allocation2 + $0x28] sm:$0xf0]  ;;  %v1279_v33 = vor.u32 %v1334_v23, %v1276_v24  ;;  %v1267_v37 = vor.u32 %v1333_v28, %v1266_v27  ;;  %v1194_v41 = vld [vmem:[#allocation2 + $0x10] sm:$0xf] }
  0x18   :  { %82 = vperm.xlu0 %1351, %v46_v5   ;;  %439 = vperm.xlu1 %1354, %v43_v4   ;;  %v1283_v4 = vor.u32 %v1337_v60, %v1282_v56  ;;  %v1332_v35 = vld [vmem:[#allocation2 + $0xa4] sm:$0xf]  ;;  %v1268_v36 = vld [vmem:[#allocation2 + $0xa8] sm:$0xf0]  ;;  %v1207_v38 = vor.u32 %v1316_v29, %v1204_v30  ;;  %v1315_v42 = vld [vmem:[#allocation2 + $0x14] sm:$0xf0] }
  0x19   :  { %1355 = vset.pattern.permute.xlu2 %v1447_v1  ;;  %851 = vmatpush.bf16.msra.mxu0 %v1219_v59  ;;  %v1271_v39 = vor.u32 %v1332_v35, %v1268_v36  ;;  %v1258_v43 = vld [vmem:[#allocation2 + $0x90] sm:$0xf]  ;;  %v1331_v45 = vld [vmem:[#allocation2 + $0x94] sm:$0xf0]  ;;  %v1314_v46 = vld [vmem:[#allocation2 + $0x14] sm:$0xf]  ;;  %v1195_v48 = vor.u32 %v1315_v42, %v1194_v41 }
  0x1a   :  { %72 = vperm.xlu2 %1355, %v44_v6   ;;  %900 = vmatpush.bf16.msra.mxu1 %v1283_v4  ;;  %v1196_v47 = vld [vmem:[#allocation2 + $0x18] sm:$0xf0]  ;;  %v1259_v49 = vor.u32 %v1331_v45, %v1258_v43  ;;  %v1330_v51 = vld [vmem:[#allocation2 + $0x94] sm:$0xf]  ;;  %v1186_v54 = vld [vmem:[#allocation2] sm:$0xf] }
  0x1b   :  { %v1199_v50 = vor.u32 %v1314_v46, %v1196_v47  ;;  %v1260_v52 = vld [vmem:[#allocation2 + $0x98] sm:$0xf0]  ;;  %v1250_v55 = vld [vmem:[#allocation2 + $0x80] sm:$0xf]  ;;  %v1329_v59 = vld [vmem:[#allocation2 + $0x84] sm:$0xf0] }
  0x1c   :  { %v1312_v60 = vld [vmem:[#allocation2 + $0x4] sm:$0xf]  ;;  %v1251_v4 = vor.u32 %v1329_v59, %v1250_v55  ;;  %v59_v16 = vld [vmem:[%s1991_s1 + $0x8] sm:$0xff] }
  0x1d   :  { %v1626_v24 = vperm.slane %v59_v16, 0  ;;  %v1642_v30 = vperm.slane %v59_v16, 2 }
  0x20   :  { %1362 = vset.pattern.permute.xlu0 %v1446_v0  ;;  %1356 = vset.pattern.permute.xlu1 %v1447_v1 }
  0x21   :  { %187 = vperm.xlu0 %1362, %v45_v8   ;;  %77 = vperm.xlu1 %1356, %v45_v8  }
  0x22   :  { %1357 = vset.pattern.permute.xlu2 %v1446_v0 }
  0x23   :  { %183 = vperm.xlu2 %1357, %v44_v6  }
  0x29   :  { %199 = vperm.xlu0 %1362, %v48_v9   ;;  %1358 = vset.pattern.permute.xlu1 %v1448_v2 }
  0x2a   :  { %313 = vperm.xlu1 %1358, %v44_v6  }
  0x2b   :  { %1359 = vset.pattern.permute.xlu2 %v1448_v2 }
  0x2c   :  { %317 = vperm.xlu2 %1359, %v45_v8  }
  0x31   :  { %1371 = vset.pattern.permute.xlu0 %v1449_v7 }
  0x32   :  { %435 = vperm.xlu0 %1371, %v42_v3   ;;  %1360 = vset.pattern.permute.xlu1 %v1449_v7  ;;  %v1284_v3 = vld [vmem:[#allocation2 + $0xc8] sm:$0xf0] }
  0x33   :  { %443 = vperm.xlu1 %1360, %v44_v6   ;;  %v1287_v6 = vor.u32 %v1336_v63, %v1284_v3  ;;  %v1263_v63 = vor.u32 %v1330_v51, %v1260_v52 }
  0x34   :  { %1361 = vset.pattern.permute.xlu2 %v1449_v7 }
  0x35   :  { %447 = vperm.xlu2 %1361, %v45_v8   ;;  %v1210_v8 = vld [vmem:[#allocation2 + $0x30] sm:$0xf]  ;;  %998 = vmatpush.bf16.msra.mxu3 %v1287_v6  ;;  %v1252_v6 = vld [vmem:[#allocation2 + $0x88] sm:$0xf0] }
  0x39   :  { %999 = vmatpush.bf16.msra.mxu3 %v1279_v33 }
  0x3a   :  { %463 = vperm.xlu0 %1371, %v49_v10  }
  0x3b   :  { %1363 = vset.pattern.permute.xlu1 %v1447_v1 }
  0x3c   :  { %87 = vperm.xlu1 %1363, %v47_v11  }
  0x3d   :  { %1364 = vset.pattern.permute.xlu2 %v1446_v0  ;;  %1000 = vmatpush.bf16.msra.mxu3 %v1271_v39 }
  0x3e   :  { %191 = vperm.xlu2 %1364, %v46_v5  }
  0x41   :  { %1001 = vmatpush.bf16.msra.mxu3 %v1263_v63 }
  0x42   :  { %1376 = vset.pattern.permute.xlu0 %v1448_v2 }
  0x43   :  { %325 = vperm.xlu0 %1376, %v47_v11  }
  0x44   :  { %1365 = vset.pattern.permute.xlu1 %v1446_v0 }
  0x45   :  { %195 = vperm.xlu1 %1365, %v47_v11  }
  0x46   :  { %1366 = vset.pattern.permute.xlu2 %v1448_v2 }
  0x47   :  { %321 = vperm.xlu2 %1366, %v46_v5  }
  0x4b   :  { %337 = vperm.xlu0 %1376, %v1540_v12  }
  0x4d   :  { %1367 = vset.pattern.permute.xlu1 %v1449_v7 }
  0x4e   :  { %451 = vperm.xlu1 %1367, %v46_v5   ;;  %v1223_v5 = vor.u32 %v1320_v61, %v1220_v62  ;;  %v1188_v61 = vld [vmem:[#allocation2 + $0x8] sm:$0xf0] }
  0x4f   :  { %1368 = vset.pattern.permute.xlu2 %v1449_v7 }
  0x50   :  { %455 = vperm.xlu2 %1368, %v47_v11   ;;  %949 = vmatpush.bf16.msra.mxu2 %v1223_v5  ;;  %v1328_v5 = vld [vmem:[#allocation2 + $0x84] sm:$0xf] }
  0x53   :  { %1385 = vset.pattern.permute.xlu0 %v1447_v1 }
  0x54   :  { %117 = vperm.xlu0 %1385, %v1568_v44   ;;  %950 = vmatpush.bf16.msra.mxu2 %v1215_v21  ;;  %v1622_v21 = vperm.slane %v59_v16, 1 }
  0x56   :  { %1369 = vset.pattern.permute.xlu1 %v1447_v1 }
  0x57   :  { %92 = vperm.xlu1 %1369, %v48_v9  }
  0x58   :  { %1370 = vset.pattern.permute.xlu2 %v1447_v1  ;;  %951 = vmatpush.bf16.msra.mxu2 %v1207_v38 }
  0x59   :  { %97 = vperm.xlu2 %1370, %v49_v10  }
  0x5c   :  { %1390 = vset.pattern.permute.xlu0 %v1449_v7  ;;  %952 = vmatpush.bf16.msra.mxu2 %v1199_v50 }
  0x5d   :  { %475 = vperm.xlu0 %1390, %v1584_v19  }
  0x5f   :  { %1372 = vset.pattern.permute.xlu1 %v1446_v0 }
  0x60   :  { %203 = vperm.xlu1 %1372, %v49_v10  }
  0x61   :  { %1373 = vset.pattern.permute.xlu2 %v1448_v2 }
  0x62   :  { %329 = vperm.xlu2 %1373, %v48_v9   ;;  %v1548_v13 = vpop.permute.xlu2 %305 }
  0x63   :  { %v371_v51 = vmul.f32 %v1642_v30, %v1548_v13 }
  0x65   :  { %1395 = vset.pattern.permute.xlu0 %v1446_v0 }
  0x68   :  { %1374 = vset.pattern.permute.xlu1 %v1448_v2 }
  0x69   :  { %333 = vperm.xlu1 %1374, %v49_v10   ;;  %v1274_v10 = vld [vmem:[#allocation2 + $0xb0] sm:$0xf] }
  0x6a   :  { %1375 = vset.pattern.permute.xlu2 %v1449_v7  ;;  %v1552_v14 = vpop.permute.xlu2 %309  ;;  %v1275_v20 = vor.u32 %v1335_v15, %v1274_v10  ;;  %v1608_v10 = vld [vmem:[%s1990_s0 + $0x68] sm:$0xff] }
  0x6b   :  { %459 = vperm.xlu2 %1375, %v48_v9   ;;  %v1319_v9 = vld [vmem:[#allocation2 + $0x34] sm:$0xf0]  ;;  %227 = vperm.xlu0 %1395, %v1608_v10   ;;  %v373_v45 = vmul.f32 %v1642_v30, %v1552_v14 }
  0x6c   :  { %v1211_v11 = vor.u32 %v1319_v9, %v1210_v8  ;;  %901 = vmatpush.bf16.msra.mxu1 %v1275_v20  ;;  %v1191_v8 = vor.u32 %v1312_v60, %v1188_v61  ;;  %v1255_v9 = vor.u32 %v1328_v5, %v1252_v6 }
  0x6e   :  { %852 = vmatpush.bf16.msra.mxu0 %v1211_v11  ;;  %953 = vmatpush.bf16.msra.mxu2 %v1191_v8 }
  0x6f   :  { %1002 = vmatpush.bf16.msra.mxu3 %v1255_v9 }
  0x70   :  { %902 = vmatpush.bf16.msra.mxu1 %v1267_v37 }
  0x71   :  { %1377 = vset.pattern.permute.xlu1 %v1447_v1 }
  0x72   :  { %102 = vperm.xlu1 %1377, %v1540_v12   ;;  %853 = vmatpush.bf16.msra.mxu0 %v1203_v34  ;;  %v1646_v34 = vperm.slane %v59_v16, 3 }
  0x73   :  { %1378 = vset.pattern.permute.xlu2 %v1447_v1  ;;  %1400 = vset.pattern.permute.xlu0 %v1447_v1 }
  0x74   :  { %107 = vperm.xlu2 %1378, %v1557_v22   ;;  %v1563_v40 = vpop.permute.xlu2 %72  ;;  %903 = vmatpush.bf16.msra.mxu1 %v1259_v49 }
  0x76   :  { %854 = vmatpush.bf16.msra.mxu0 %v1195_v48 }
  0x78   :  { %904 = vmatpush.bf16.msra.mxu1 %v1251_v4 }
  0x79   :  { %v1571_v57 = vpop.permute.xlu1 %175 }
  0x7a   :  { %v1573_v58 = vpop.permute.xlu0 %62  ;;  %1379 = vset.pattern.permute.xlu1 %v1446_v0 }
  0x7b   :  { %207 = vperm.xlu1 %1379, %v1540_v12   ;;  %v143_v38 = vmul.f32 %v1626_v24, %v1573_v58 }
  0x7c   :  { %1380 = vset.pattern.permute.xlu2 %v1446_v0 }
  0x7d   :  { %211 = vperm.xlu2 %1380, %v1557_v22   ;;  %v1579_v18 = vpop.permute.xlu2 %183 }
  0x81   :  { %v1588_v31 = vpop.permute.xlu1 %179 }
  0x82   :  { %v1590_v32 = vpop.permute.xlu0 %67  ;;  %v243_v26 = vmul.f32 %v1622_v21, %v1588_v31 }
  0x83   :  { %1381 = vset.pattern.permute.xlu1 %v1448_v2  ;;  %v145_v28 = vmul.f32 %v1626_v24, %v1590_v32 }
  0x84   :  { %341 = vperm.xlu1 %1381, %v1557_v22  }
  0x85   :  { %1382 = vset.pattern.permute.xlu2 %v1449_v7  ;;  %v275_v41 = vadd.f32 %v243_v26, %v145_v28  ;;  %v147_v26 = vmul.f32 %v1626_v24, %v1563_v40 }
  0x86   :  { %467 = vperm.xlu2 %1382, %v1540_v12   ;;  %v1596_v53 = vpop.permute.xlu2 %317  ;;  %v1313_v12 = vld [vmem:[#allocation2 + $0x4] sm:$0xf0] }
  0x87   :  { %v1187_v3 = vor.u32 %v1313_v12, %v1186_v54  ;;  %v405_v50 = vadd.f32 %v373_v45, %v275_v41 }
  0x89   :  { %855 = vmatpush.bf16.msra.mxu0 %v1187_v3 }
  0x8a   :  { %v1599_v56 = vpop.permute.xlu0 %82  ;;  %v440_v62 = vpop.permute.xlu1 %439 }
  0x8b   :  { %v503_v47 = vmul.f32 %v1646_v34, %v440_v62 }
  0x8c   :  { %1383 = vset.pattern.permute.xlu1 %v1449_v7 }
  0x8d   :  { %471 = vperm.xlu1 %1383, %v1557_v22   ;;  %v58_v22 = vld [vmem:[%s1991_s1] sm:$0xff] }
  0x8e   :  { %1384 = vset.pattern.permute.xlu2 %v1447_v1  ;;  %v1620_v20 = vperm.slane %v58_v22, 1  ;;  %v1624_v23 = vperm.slane %v58_v22, 0  ;;  %v1640_v29 = vperm.slane %v58_v22, 2  ;;  %v1644_v33 = vperm.slane %v58_v22, 3 }
  0x8f   :  { %112 = vperm.xlu2 %1384, %v1584_v19   ;;  %v1611_v15 = vpop.permute.xlu2 %447 }
  0x90   :  { %v242_v25 = vmul.f32 %v1620_v20, %v1588_v31  ;;  %v144_v27 = vmul.f32 %v1624_v23, %v1590_v32  ;;  %v240_v31 = vmul.f32 %v1620_v20, %v1571_v57  ;;  %v241_v32 = vmul.f32 %v1622_v21, %v1571_v57  ;;  %v564_v57 = vld [vmem:[%s1992_s2] sm:$0x3] }
  0x91   :  { %v142_v37 = vmul.f32 %v1624_v23, %v1573_v58  ;;  %v372_v43 = vmul.f32 %v1640_v29, %v1552_v14  ;;  %v502_v46 = vmul.f32 %v1644_v33, %v440_v62  ;;  %v370_v14 = vmul.f32 %v1640_v29, %v1548_v13 }
  0x92   :  { %v274_v39 = vadd.f32 %v242_v25, %v144_v27  ;;  %v273_v48 = vadd.f32 %v241_v32, %v143_v38  ;;  %v1677_v54 = vperm.slane %v564_v57, 0  ;;  %v1679_v12 = vperm.slane %v564_v57, 1 }
  0x93   :  { %v188_v11 = vpop.permute.xlu0 %187  ;;  %v78_v17 = vpop.permute.xlu1 %77  ;;  %v272_v58 = vadd.f32 %v240_v31, %v142_v37  ;;  %v146_v25 = vmul.f32 %v1624_v23, %v1563_v40  ;;  %v245_v27 = vmul.f32 %v1622_v21, %v1579_v18  ;;  %v376_v28 = vmul.f32 %v1640_v29, %v1596_v53 }
  0x94   :  { %v404_v49 = vadd.f32 %v372_v43, %v274_v39  ;;  %v403_v60 = vadd.f32 %v371_v51, %v273_v48  ;;  %v148_v3 = vmul.f32 %v1624_v23, %v78_v17  ;;  %v149_v4 = vmul.f32 %v1626_v24, %v78_v17 }
  0x95   :  { %1386 = vset.pattern.permute.xlu1 %v1446_v0  ;;  %v402_v59 = vadd.f32 %v370_v14, %v272_v58  ;;  %v246_v13 = vmul.f32 %v1620_v20, %v188_v11  ;;  %v247_v5 = vmul.f32 %v1622_v21, %v188_v11  ;;  %v244_v17 = vmul.f32 %v1620_v20, %v1579_v18  ;;  %v1703_v11 = vld [vmem:[%s1990_s0 + $0x60] sm:$0xff] }
  0x96   :  { %215 = vperm.xlu1 %1386, %v1584_v19   ;;  %v534_v52 = vadd.f32 %v502_v46, %v404_v49  ;;  %v377_v31 = vmul.f32 %v1642_v30, %v1596_v53  ;;  %v506_v58 = vmul.f32 %v1644_v33, %v1611_v15 }
  0x97   :  { %1387 = vset.pattern.permute.xlu2 %v1446_v0  ;;  %v278_v18 = vadd.f32 %v246_v13, %v148_v3  ;;  %v279_v37 = vadd.f32 %v247_v5, %v149_v4  ;;  %v276_v53 = vadd.f32 %v244_v17, %v146_v25 }
  0x98   :  { %219 = vperm.xlu2 %1387, %v1568_v44   ;;  %v1650_v36 = vpop.permute.xlu2 %191  ;;  %v572_v22 = vadd.f32 %v1677_v54, %v534_v52 }
  0x99   :  { %v408_v14 = vadd.f32 %v376_v28, %v278_v18  ;;  %v409_v51 = vadd.f32 %v377_v31, %v279_v37  ;;  %v151_v18 = vmul.f32 %v1626_v24, %v1599_v56  ;;  %v249_v37 = vmul.f32 %v1622_v21, %v1650_v36 }
  0x9a   :  { %v604_v43 = vmax.f32 %v572_v22, 0.0  ;;  %v248_v22 = vmul.f32 %v1620_v20, %v1650_v36 }
  0x9b   :  { %v1648_v35 = vpop.permute.xlu0 %199  ;;  %v281_v36 = vadd.f32 %v249_v37, %v151_v18 }
  0x9c   :  { %v314_v42 = vpop.permute.xlu1 %313 }
  0x9d   :  { %v374_v38 = vmul.f32 %v1640_v29, %v314_v42  ;;  %v375_v39 = vmul.f32 %v1642_v30, %v314_v42  ;;  %v507_v42 = vmul.f32 %v1646_v34, %v1611_v15 }
  0x9e   :  { %1388 = vset.pattern.permute.xlu1 %v1448_v2 }
  0x9f   :  { %345 = vperm.xlu1 %1388, %v1584_v19   ;;  %v535_v19 = vadd.f32 %v503_v47, %v405_v50  ;;  %v1725_v50 = vld [vmem:[%s1990_s0 + $0x70] sm:$0xff]  ;;  %v406_v52 = vadd.f32 %v374_v38, %v276_v53  ;;  %v539_v3 = vadd.f32 %v507_v42, %v409_v51 }
  0xa0   :  { %1389 = vset.pattern.permute.xlu2 %v1448_v2  ;;  %132 = vperm.xlu0 %1400, %v1725_v50  }
  0xa1   :  { %349 = vperm.xlu2 %1389, %v1568_v44   ;;  %v1683_v63 = vpop.permute.xlu2 %321  ;;  %v573_v16 = vadd.f32 %v1679_v12, %v535_v19 }
  0xa3   :  { %v605_v46 = vmax.f32 %v573_v16, 0.0 }
  0xa4   :  { %v436_v55 = vpop.permute.xlu0 %435 }
  0xa5   :  { %v500_v61 = vmul.f32 %v1644_v33, %v436_v55  ;;  %v501_v62 = vmul.f32 %v1646_v34, %v436_v55  ;;  %v444_v6 = vpop.permute.xlu1 %443 }
  0xa6   :  { %v504_v47 = vmul.f32 %v1644_v33, %v444_v6  ;;  %v505_v57 = vmul.f32 %v1646_v34, %v444_v6  ;;  %v577_v6 = vadd.f32 %v1679_v12, %v539_v3 }
  0xa7   :  { %v532_v8 = vadd.f32 %v500_v61, %v402_v59  ;;  %v533_v9 = vadd.f32 %v501_v62, %v403_v60  ;;  %1391 = vset.pattern.permute.xlu1 %v1449_v7  ;;  %v538_v62 = vadd.f32 %v506_v58, %v408_v14 }
  0xa8   :  { %479 = vperm.xlu1 %1391, %v1568_v44   ;;  %v277_v44 = vadd.f32 %v245_v27, %v147_v26  ;;  %v536_v15 = vadd.f32 %v504_v47, %v406_v52  ;;  %1405 = vset.pattern.permute.xlu0 %v1448_v2  ;;  %v378_v47 = vmul.f32 %v1640_v29, %v1683_v63 }
  0xa9   :  { %v570_v40 = vadd.f32 %v1677_v54, %v532_v8  ;;  %v571_v32 = vadd.f32 %v1679_v12, %v533_v9  ;;  %1392 = vset.pattern.permute.xlu2 %v1447_v1  ;;  %v576_v5 = vadd.f32 %v1677_v54, %v538_v62  ;;  %v1741_v8 = vld [vmem:[%s1990_s0 + $0x78] sm:$0xff]  ;;  %v150_v9 = vmul.f32 %v1624_v23, %v1599_v56 }
  0xaa   :  { %122 = vperm.xlu2 %1392, %v1703_v11   ;;  %v407_v19 = vadd.f32 %v375_v39, %v277_v44  ;;  %v456_v60 = vpop.permute.xlu2 %455  ;;  %v574_v4 = vadd.f32 %v1677_v54, %v536_v15  ;;  %365 = vperm.xlu0 %1405, %v1741_v8   ;;  %v609_v39 = vmax.f32 %v577_v6, 0.0 }
  0xab   :  { %v602_v41 = vmax.f32 %v570_v40, 0.0  ;;  %v603_v45 = vmax.f32 %v571_v32, 0.0  ;;  %v608_v38 = vmax.f32 %v576_v5, 0.0  ;;  %v280_v53 = vadd.f32 %v248_v22, %v150_v9 }
  0xac   :  { %v1727_v55 = vpop.permute.xlu0 %463  ;;  %v537_v61 = vadd.f32 %v505_v57, %v407_v19  ;;  %v606_v26 = vmax.f32 %v574_v4, 0.0  ;;  %v379_v57 = vmul.f32 %v1642_v30, %v1683_v63  ;;  %v510_v58 = vmul.f32 %v1644_v33, %v456_v60 }
  0xad   :  { %v634_v48 = vpack.c.bf16 %v604_v43, %v602_v41  ;;  %v635_v49 = vpack.c.bf16 %v605_v46, %v603_v45  ;;  %v511_v42 = vmul.f32 %v1646_v34, %v456_v60  ;;  %v410_v51 = vadd.f32 %v378_v47, %v280_v53 }
  0xae   :  { %v88_v59 = vpop.permute.xlu1 %87  ;;  %v575_v13 = vadd.f32 %v1679_v12, %v537_v61  ;;  %v636_v44 = vpack.c.bf16 %v608_v38, %v606_v26  ;;  %v411_v52 = vadd.f32 %v379_v57, %v281_v36  ;;  %v514_v36 = vmul.f32 %v1644_v33, %v1727_v55 }
  0xaf   :  { %856 = vmatmul.bf16.vlgmr.msra.gmra.mxu0 %v634_v48  ;;  %905 = vmatmul.bf16.vlgmr.msra.gmra.mxu1 %v635_v49  ;;  %v152_v27 = vmul.f32 %v1624_v23, %v88_v59  ;;  %v153_v28 = vmul.f32 %v1626_v24, %v88_v59  ;;  %v515_v47 = vmul.f32 %v1646_v34, %v1727_v55 }
  0xb0   :  { %954 = vmatmul.bf16.vlgmr.msra.gmra.mxu2 %v634_v48  ;;  %1003 = vmatmul.bf16.vlgmr.msra.gmra.mxu3 %v635_v49  ;;  %v607_v17 = vmax.f32 %v575_v13, 0.0 }
  0xb1   :  { %1393 = vset.pattern.permute.xlu1 %v1447_v1 }
  0xb2   :  { %127 = vperm.xlu1 %1393, %v1608_v10   ;;  %1394 = vset.pattern.permute.xlu2 %v1446_v0  ;;  %v637_v56 = vpack.c.bf16 %v609_v39, %v607_v17  ;;  %v252_v17 = vmul.f32 %v1620_v20, %v1648_v35 }
  0xb3   :  { %223 = vperm.xlu2 %1394, %v1703_v11   ;;  %v1753_v32 = vpop.permute.xlu2 %97  ;;  %1410 = vset.pattern.permute.xlu0 %v1447_v1 }
  0xb5   :  { %v326_v25 = vpop.permute.xlu0 %325 }
  0xb6   :  { %v380_v45 = vmul.f32 %v1640_v29, %v326_v25  ;;  %v381_v46 = vmul.f32 %v1642_v30, %v326_v25 }
  0xb7   :  { %v196_v16 = vpop.permute.xlu1 %195 }
  0xb8   :  { %v250_v31 = vmul.f32 %v1620_v20, %v196_v16  ;;  %v251_v40 = vmul.f32 %v1622_v21, %v196_v16 }
  0xba   :  { %1396 = vset.pattern.permute.xlu1 %v1448_v2  ;;  %v282_v41 = vadd.f32 %v250_v31, %v152_v27  ;;  %v283_v43 = vadd.f32 %v251_v40, %v153_v28  ;;  %v253_v27 = vmul.f32 %v1622_v21, %v1648_v35 }
  0xbb   :  { %353 = vperm.xlu1 %1396, %v1703_v11   ;;  %1397 = vset.pattern.permute.xlu2 %v1448_v2 }
  0xbc   :  { %357 = vperm.xlu2 %1397, %v1608_v10   ;;  %v412_v48 = vadd.f32 %v380_v45, %v282_v41  ;;  %v413_v49 = vadd.f32 %v381_v46, %v283_v43  ;;  %v330_v60 = vpop.permute.xlu2 %329 }
  0xbd   :  { %v382_v18 = vmul.f32 %v1640_v29, %v330_v60  ;;  %v383_v37 = vmul.f32 %v1642_v30, %v330_v60 }
  0xbe   :  { %v542_v63 = vadd.f32 %v510_v58, %v412_v48  ;;  %v543_v15 = vadd.f32 %v511_v42, %v413_v49 }
  0xbf   :  { %861 = vmatmul.bf16.gmra.mxu0 %v636_v44  ;;  %910 = vmatmul.bf16.gmra.mxu1 %v637_v56 }
  0xc0   :  { %959 = vmatmul.bf16.gmra.mxu2 %v636_v44  ;;  %1008 = vmatmul.bf16.gmra.mxu3 %v637_v56  ;;  %v452_v14 = vpop.permute.xlu1 %451  ;;  %v580_v13 = vadd.f32 %v1677_v54, %v542_v63  ;;  %v581_v5 = vadd.f32 %v1679_v12, %v543_v15  ;;  %v157_v56 = vmul.f32 %v1626_v24, %v1753_v32 }
  0xc1   :  { %v508_v19 = vmul.f32 %v1644_v33, %v452_v14  ;;  %v509_v59 = vmul.f32 %v1646_v34, %v452_v14 }
  0xc2   :  { %v612_v16 = vmax.f32 %v580_v13, 0.0  ;;  %v613_v25 = vmax.f32 %v581_v5, 0.0 }
  0xc3   :  { %1398 = vset.pattern.permute.xlu1 %v1449_v7  ;;  %v540_v61 = vadd.f32 %v508_v19, %v410_v51  ;;  %v541_v62 = vadd.f32 %v509_v59, %v411_v52 }
  0xc4   :  { %483 = vperm.xlu1 %1398, %v1703_v11   ;;  %1399 = vset.pattern.permute.xlu2 %v1449_v7 }
  0xc5   :  { %487 = vperm.xlu2 %1399, %v1608_v10   ;;  %v578_v3 = vadd.f32 %v1677_v54, %v540_v61  ;;  %v579_v4 = vadd.f32 %v1679_v12, %v541_v62  ;;  %v460_v11 = vpop.permute.xlu2 %459 }
  0xc6   :  { %v512_v45 = vmul.f32 %v1644_v33, %v460_v11  ;;  %v513_v46 = vmul.f32 %v1646_v34, %v460_v11 }
  0xc7   :  { %v610_v6 = vmax.f32 %v578_v3, 0.0  ;;  %v611_v9 = vmax.f32 %v579_v4, 0.0 }
  0xc9   :  { %v93_v22 = vpop.permute.xlu1 %92  ;;  %v638_v26 = vpack.c.bf16 %v612_v16, %v610_v6  ;;  %v639_v10 = vpack.c.bf16 %v613_v25, %v611_v9  ;;  %v338_v16 = vpop.permute.xlu0 %337 }
  0xca   :  { %v154_v28 = vmul.f32 %v1624_v23, %v93_v22  ;;  %v155_v31 = vmul.f32 %v1626_v24, %v93_v22 }
  0xcc   :  { %1401 = vset.pattern.permute.xlu1 %v1447_v1  ;;  %v284_v38 = vadd.f32 %v252_v17, %v154_v28  ;;  %v285_v39 = vadd.f32 %v253_v27, %v155_v31  ;;  %v386_v17 = vmul.f32 %v1640_v29, %v338_v16  ;;  %v387_v27 = vmul.f32 %v1642_v30, %v338_v16 }
  0xcd   :  { %137 = vperm.xlu1 %1401, %v1741_v8   ;;  %1402 = vset.pattern.permute.xlu2 %v1446_v0 }
  0xce   :  { %231 = vperm.xlu2 %1402, %v1725_v50   ;;  %v108_v41 = vpop.permute.xlu2 %107  ;;  %v414_v35 = vadd.f32 %v382_v18, %v284_v38  ;;  %v415_v43 = vadd.f32 %v383_v37, %v285_v39 }
  0xcf   :  { %866 = vmatmul.bf16.gmra.mxu0 %v638_v26  ;;  %915 = vmatmul.bf16.gmra.mxu1 %v639_v10  ;;  %v161_v31 = vmul.f32 %v1626_v24, %v108_v41 }
  0xd0   :  { %964 = vmatmul.bf16.gmra.mxu2 %v638_v26  ;;  %1013 = vmatmul.bf16.gmra.mxu3 %v639_v10  ;;  %v544_v57 = vadd.f32 %v512_v45, %v414_v35  ;;  %v545_v58 = vadd.f32 %v513_v46, %v415_v43 }
  0xd2   :  { %v204_v40 = vpop.permute.xlu1 %203  ;;  %v582_v55 = vadd.f32 %v1677_v54, %v544_v57  ;;  %v583_v63 = vadd.f32 %v1679_v12, %v545_v58 }
  0xd3   :  { %v254_v53 = vmul.f32 %v1620_v20, %v204_v40  ;;  %v255_v44 = vmul.f32 %v1622_v21, %v204_v40 }
  0xd4   :  { %v614_v62 = vmax.f32 %v582_v55, 0.0  ;;  %v615_v4 = vmax.f32 %v583_v63, 0.0 }
  0xd5   :  { %1403 = vset.pattern.permute.xlu1 %v1446_v0  ;;  %v156_v0 = vmul.f32 %v1624_v23, %v1753_v32  ;;  %v287_v49 = vadd.f32 %v255_v44, %v157_v56 }
  0xd6   :  { %235 = vperm.xlu1 %1403, %v1741_v8   ;;  %1404 = vset.pattern.permute.xlu2 %v1448_v2 }
  0xd7   :  { %361 = vperm.xlu2 %1404, %v1725_v50   ;;  %v286_v48 = vadd.f32 %v254_v53, %v156_v0  ;;  %v212_v32 = vpop.permute.xlu2 %211 }
  0xd8   :  { %v258_v40 = vmul.f32 %v1620_v20, %v212_v32  ;;  %v259_v18 = vmul.f32 %v1622_v21, %v212_v32 }
  0xda   :  { %v291_v44 = vadd.f32 %v259_v18, %v161_v31 }
  0xdb   :  { %v334_v42 = vpop.permute.xlu1 %333 }
  0xdc   :  { %v384_v2 = vmul.f32 %v1640_v29, %v334_v42  ;;  %v385_v14 = vmul.f32 %v1642_v30, %v334_v42 }
  0xde   :  { %1406 = vset.pattern.permute.xlu1 %v1449_v7  ;;  %v416_v51 = vadd.f32 %v384_v2, %v286_v48  ;;  %v417_v52 = vadd.f32 %v385_v14, %v287_v49 }
  0xdf   :  { %491 = vperm.xlu1 %1406, %v1725_v50   ;;  %1407 = vset.pattern.permute.xlu2 %v1449_v7 }
  0xe0   :  { %v546_v19 = vadd.f32 %v514_v36, %v416_v51  ;;  %v547_v59 = vadd.f32 %v515_v47, %v417_v52  ;;  %495 = vperm.xlu2 %1407, %v1741_v8   ;;  %v468_v6 = vpop.permute.xlu2 %467 }
  0xe1   :  { %v516_v37 = vmul.f32 %v1644_v33, %v468_v6  ;;  %v517_v38 = vmul.f32 %v1646_v34, %v468_v6 }
  0xe2   :  { %v584_v15 = vadd.f32 %v1677_v54, %v546_v19  ;;  %v585_v60 = vadd.f32 %v1679_v12, %v547_v59 }
  0xe4   :  { %v103_v61 = vpop.permute.xlu1 %102  ;;  %v616_v3 = vmax.f32 %v584_v15, 0.0  ;;  %v617_v50 = vmax.f32 %v585_v60, 0.0 }
  0xe5   :  { %v158_v25 = vmul.f32 %v1624_v23, %v103_v61  ;;  %v159_v11 = vmul.f32 %v1626_v24, %v103_v61  ;;  %v118_v61 = vpop.permute.xlu0 %117 }
  0xe6   :  { %v640_v13 = vpack.c.bf16 %v616_v3, %v614_v62  ;;  %v641_v5 = vpack.c.bf16 %v617_v50, %v615_v4  ;;  %v164_v6 = vmul.f32 %v1624_v23, %v118_v61 }
  0xe7   :  { %1408 = vset.pattern.permute.xlu1 %v1447_v1 }
  0xe8   :  { %871 = vmatmul.bf16.gmra.mxu0 %v640_v13  ;;  %920 = vmatmul.bf16.gmra.mxu1 %v641_v5 }
  0xe9   :  { %969 = vmatmul.bf16.gmra.mxu2 %v640_v13  ;;  %1018 = vmatmul.bf16.gmra.mxu3 %v641_v5  ;;  %v113_v9 = vpop.permute.xlu2 %112 }
  0xea   :  { %1409 = vset.pattern.permute.xlu2 %v1447_v1  ;;  %v160_v1 = vmul.f32 %v1624_v23, %v108_v41  ;;  %v162_v50 = vmul.f32 %v1624_v23, %v113_v9  ;;  %v163_v13 = vmul.f32 %v1626_v24, %v113_v9 }
  0xec   :  { %v290_v53 = vadd.f32 %v258_v40, %v160_v1 }
  0xed   :  { %v208_v7 = vpop.permute.xlu1 %207  ;;  %v476_v16 = vpop.permute.xlu0 %475 }
  0xee   :  { %v256_v8 = vmul.f32 %v1620_v20, %v208_v7  ;;  %v257_v22 = vmul.f32 %v1622_v21, %v208_v7  ;;  %v165_v7 = vmul.f32 %v1626_v24, %v118_v61  ;;  %v520_v9 = vmul.f32 %v1644_v33, %v476_v16 }
  0xf0   :  { %v288_v26 = vadd.f32 %v256_v8, %v158_v25  ;;  %v289_v10 = vadd.f32 %v257_v22, %v159_v11 }
  0xf2   :  { %v418_v39 = vadd.f32 %v386_v17, %v288_v26  ;;  %v419_v35 = vadd.f32 %v387_v27, %v289_v10  ;;  %v220_v43 = vpop.permute.xlu2 %219 }
  0xf3   :  { %v262_v25 = vmul.f32 %v1620_v20, %v220_v43  ;;  %v263_v11 = vmul.f32 %v1622_v21, %v220_v43 }
  0xf4   :  { %v548_v0 = vadd.f32 %v516_v37, %v418_v39  ;;  %v549_v56 = vadd.f32 %v517_v38, %v419_v35 }
  0xf5   :  { %v294_v40 = vadd.f32 %v262_v25, %v164_v6  ;;  %v295_v18 = vadd.f32 %v263_v11, %v165_v7 }
  0xf6   :  { %v342_v28 = vpop.permute.xlu1 %341  ;;  %v586_v49 = vadd.f32 %v1677_v54, %v548_v0  ;;  %v587_v2 = vadd.f32 %v1679_v12, %v549_v56 }
  0xf7   :  { %v388_v45 = vmul.f32 %v1640_v29, %v342_v28  ;;  %v389_v46 = vmul.f32 %v1642_v30, %v342_v28  ;;  %v521_v28 = vmul.f32 %v1646_v34, %v476_v16 }
  0xf8   :  { %v618_v32 = vmax.f32 %v586_v49, 0.0  ;;  %v619_v59 = vmax.f32 %v587_v2, 0.0 }
  0xf9   :  { %v420_v36 = vadd.f32 %v388_v45, %v290_v53  ;;  %v421_v47 = vadd.f32 %v389_v46, %v291_v44 }
  0xfb   :  { %v350_v14 = vpop.permute.xlu2 %349 }
  0xfc   :  { %v392_v1 = vmul.f32 %v1640_v29, %v350_v14  ;;  %v393_v31 = vmul.f32 %v1642_v30, %v350_v14 }
  0xfe   :  { %v424_v45 = vadd.f32 %v392_v1, %v294_v40  ;;  %v425_v43 = vadd.f32 %v393_v31, %v295_v18 }
  0xff   :  { %v472_v41 = vpop.permute.xlu1 %471 }
 0x100   :  { %v518_v57 = vmul.f32 %v1644_v33, %v472_v41  ;;  %v519_v58 = vmul.f32 %v1646_v34, %v472_v41 }
 0x102   :  { %v550_v42 = vadd.f32 %v518_v57, %v420_v36  ;;  %v551_v48 = vadd.f32 %v519_v58, %v421_v47 }
 0x104   :  { %v588_v51 = vadd.f32 %v1677_v54, %v550_v42  ;;  %v589_v52 = vadd.f32 %v1679_v12, %v551_v48  ;;  %v1842_v62 = vpop.permute.xlu2 %122 }
 0x106   :  { %v620_v19 = vmax.f32 %v588_v51, 0.0  ;;  %v621_v55 = vmax.f32 %v589_v52, 0.0  ;;  %v228_v52 = vpop.permute.xlu0 %227 }
 0x108   :  { %v216_v63 = vpop.permute.xlu1 %215  ;;  %v642_v15 = vpack.c.bf16 %v620_v19, %v618_v32  ;;  %v643_v60 = vpack.c.bf16 %v621_v55, %v619_v59  ;;  %v682_v32 = vld [vmem:[%s1994_s4] sm:$0x3]  ;;  %v266_v55 = vmul.f32 %v1620_v20, %v228_v52 }
 0x109   :  { %v260_v3 = vmul.f32 %v1620_v20, %v216_v63  ;;  %v261_v4 = vmul.f32 %v1622_v21, %v216_v63  ;;  %v267_v63 = vmul.f32 %v1622_v21, %v228_v52  ;;  %v1879_v25 = vperm.slane %v682_v32, 1 }
 0x10a   :  { %876 = vmatmul.bf16.gmra.mxu0 %v642_v15  ;;  %925 = vmatmul.bf16.gmra.mxu1 %v643_v60 }
 0x10b   :  { %974 = vmatmul.bf16.gmra.mxu2 %v642_v15  ;;  %1023 = vmatmul.bf16.gmra.mxu3 %v643_v60  ;;  %v292_v26 = vadd.f32 %v260_v3, %v162_v50  ;;  %v293_v10 = vadd.f32 %v261_v4, %v163_v13  ;;  %v1871_v15 = vperm.slane %v682_v32, 0 }
 0x10d   :  { %v224_v37 = vpop.permute.xlu2 %223 }
 0x111   :  { %v346_v5 = vpop.permute.xlu1 %345 }
 0x112   :  { %v390_v8 = vmul.f32 %v1640_v29, %v346_v5  ;;  %v391_v22 = vmul.f32 %v1642_v30, %v346_v5 }
 0x114   :  { %v422_v17 = vadd.f32 %v390_v8, %v292_v26  ;;  %v423_v27 = vadd.f32 %v391_v22, %v293_v10  ;;  %v166_v8 = vmul.f32 %v1624_v23, %v1842_v62  ;;  %v264_v22 = vmul.f32 %v1620_v20, %v224_v37 }
 0x116   :  { %v552_v38 = vadd.f32 %v520_v9, %v422_v17  ;;  %v553_v39 = vadd.f32 %v521_v28, %v423_v27  ;;  %v358_v49 = vpop.permute.xlu2 %357  ;;  %v167_v27 = vmul.f32 %v1626_v24, %v1842_v62  ;;  %v265_v9 = vmul.f32 %v1622_v21, %v224_v37 }
 0x117   :  { %v396_v60 = vmul.f32 %v1640_v29, %v358_v49  ;;  %v397_v61 = vmul.f32 %v1642_v30, %v358_v49  ;;  %v296_v18 = vadd.f32 %v264_v22, %v166_v8 }
 0x118   :  { %v590_v56 = vadd.f32 %v1677_v54, %v552_v38  ;;  %v591_v41 = vadd.f32 %v1679_v12, %v553_v39 }
 0x11a   :  { %v480_v35 = vpop.permute.xlu1 %479  ;;  %v622_v57 = vmax.f32 %v590_v56, 0.0  ;;  %v623_v42 = vmax.f32 %v591_v41, 0.0 }
 0x11b   :  { %v522_v46 = vmul.f32 %v1644_v33, %v480_v35  ;;  %v523_v53 = vmul.f32 %v1646_v34, %v480_v35 }
 0x11d   :  { %v554_v44 = vadd.f32 %v522_v46, %v424_v45  ;;  %v555_v0 = vadd.f32 %v523_v53, %v425_v43  ;;  %v297_v46 = vadd.f32 %v265_v9, %v167_v27 }
 0x11f   :  { %v592_v36 = vadd.f32 %v1677_v54, %v554_v44  ;;  %v593_v47 = vadd.f32 %v1679_v12, %v555_v0  ;;  %v488_v5 = vpop.permute.xlu2 %487 }
 0x120   :  { %v526_v10 = vmul.f32 %v1644_v33, %v488_v5  ;;  %v527_v17 = vmul.f32 %v1646_v34, %v488_v5 }
 0x121   :  { %v624_v58 = vmax.f32 %v592_v36, 0.0  ;;  %v625_v48 = vmax.f32 %v593_v47, 0.0 }
 0x123   :  { %v644_v14 = vpack.c.bf16 %v624_v58, %v622_v57  ;;  %v645_v51 = vpack.c.bf16 %v625_v48, %v623_v42 }
 0x124   :  { %v128_v2 = vpop.permute.xlu1 %127 }
 0x125   :  { %881 = vmatmul.bf16.gmra.mxu0 %v644_v14  ;;  %930 = vmatmul.bf16.gmra.mxu1 %v645_v51  ;;  %v168_v19 = vmul.f32 %v1624_v23, %v128_v2  ;;  %v169_v59 = vmul.f32 %v1626_v24, %v128_v2 }
 0x126   :  { %979 = vmatmul.bf16.gmra.mxu2 %v644_v14  ;;  %1028 = vmatmul.bf16.gmra.mxu3 %v645_v51 }
 0x127   :  { %v298_v3 = vadd.f32 %v266_v55, %v168_v19  ;;  %v299_v4 = vadd.f32 %v267_v63, %v169_v59 }
 0x128   :  { %v232_v37 = vpop.permute.xlu2 %231 }
 0x129   :  { %v428_v11 = vadd.f32 %v396_v60, %v298_v3  ;;  %v429_v26 = vadd.f32 %v397_v61, %v299_v4  ;;  %v133_v3 = vpop.permute.xlu0 %132 }
 0x12b   :  { %v558_v38 = vadd.f32 %v526_v10, %v428_v11  ;;  %v559_v39 = vadd.f32 %v527_v17, %v429_v26 }
 0x12c   :  { %v857_v50 = vpop.f32.mrf.mxu0  ;;  %v906_v13 = vpop.f32.mrf.mxu1 }
 0x12d   :  { %v858_v6 = vadd.f32 %v857_v50, %v1871_v15  ;;  %v354_v7 = vpop.permute.xlu1 %353  ;;  %v596_v57 = vadd.f32 %v1677_v54, %v558_v38  ;;  %v597_v58 = vadd.f32 %v1679_v12, %v559_v39  ;;  %v268_v38 = vmul.f32 %v1620_v20, %v232_v37 }
 0x12e   :  { %v394_v28 = vmul.f32 %v1640_v29, %v354_v7  ;;  %v395_v1 = vmul.f32 %v1642_v30, %v354_v7  ;;  %v170_v39 = vmul.f32 %v1624_v23, %v133_v3 }
 0x12f   :  { %v907_v16 = vadd.f32 %v906_v13, %v858_v6  ;;  %v628_v60 = vmax.f32 %v596_v57, 0.0  ;;  %v629_v13 = vmax.f32 %v597_v58, 0.0  ;;  %v171_v57 = vmul.f32 %v1626_v24, %v133_v3 }
 0x130   :  { %v426_v44 = vadd.f32 %v394_v28, %v296_v18  ;;  %v427_v56 = vadd.f32 %v395_v1, %v297_v46 }
 0x131   :  { %v1044_v42 = vmax.f32 %v907_v16, 0.0  ;;  %v362_v26 = vpop.permute.xlu2 %361 }
 0x133   :  { %v955_v31 = vpop.f32.mrf.mxu2  ;;  %v1004_v40 = vpop.f32.mrf.mxu3 }
 0x134   :  { %v956_v35 = vadd.f32 %v955_v31, %v1879_v25  ;;  %v859_v45 = vpop.f32.mrf.mxu0  ;;  %v908_v43 = vpop.f32.mrf.mxu1 }
 0x135   :  { %v860_v53 = vadd.f32 %v859_v45, %v1871_v15 }
 0x136   :  { %v1005_v62 = vadd.f32 %v1004_v40, %v956_v35  ;;  %v484_v0 = vpop.permute.xlu1 %483  ;;  %v366_v40 = vpop.permute.xlu0 %365 }
 0x137   :  { %v909_v41 = vadd.f32 %v908_v43, %v860_v53  ;;  %v524_v36 = vmul.f32 %v1644_v33, %v484_v0  ;;  %v525_v47 = vmul.f32 %v1646_v34, %v484_v0  ;;  %v400_v53 = vmul.f32 %v1640_v29, %v366_v40 }
 0x138   :  { %v1045_v16 = vmax.f32 %v1005_v62, 0.0 }
 0x139   :  { %v1046_v48 = vmax.f32 %v909_v41, 0.0  ;;  %v556_v49 = vadd.f32 %v524_v36, %v426_v44  ;;  %v557_v2 = vadd.f32 %v525_v47, %v427_v56  ;;  %v401_v44 = vmul.f32 %v1642_v30, %v366_v40 }
 0x13a   :  { %v496_v62 = vpop.permute.xlu2 %495  ;;  %v269_v47 = vmul.f32 %v1622_v21, %v232_v37 }
 0x13b   :  { %v957_v14 = vpop.f32.mrf.mxu2  ;;  %v1006_v51 = vpop.f32.mrf.mxu3  ;;  %v594_v52 = vadd.f32 %v1677_v54, %v556_v49  ;;  %v595_v32 = vadd.f32 %v1679_v12, %v557_v2  ;;  %v1896_v19 = vpack.c.bf16 %v1046_v48, %v1044_v42  ;;  %v530_v49 = vmul.f32 %v1644_v33, %v496_v62 }
 0x13c   :  { %v958_v59 = vadd.f32 %v957_v14, %v1879_v25  ;;  %v862_v55 = vpop.f32.mrf.mxu0  ;;  %v911_v63 = vpop.f32.mrf.mxu1  ;;  %v300_v14 = vadd.f32 %v268_v38, %v170_v39 }
 0x13d   :  { %v863_v61 = vadd.f32 %v862_v55, %v1871_v15  ;;  %v626_v4 = vmax.f32 %v594_v52, 0.0  ;;  %v627_v50 = vmax.f32 %v595_v32, 0.0  ;;  %v531_v52 = vmul.f32 %v1646_v34, %v496_v62 }
 0x13e   :  { %v1007_v5 = vadd.f32 %v1006_v51, %v958_v59  ;;  %v398_v59 = vmul.f32 %v1640_v29, %v362_v26  ;;  %v301_v55 = vadd.f32 %v269_v47, %v171_v57 }
 0x13f   :  { %v912_v6 = vadd.f32 %v911_v63, %v863_v61  ;;  %v138_v7 = vpop.permute.xlu1 %137  ;;  %v646_v8 = vpack.c.bf16 %v628_v60, %v626_v4  ;;  %v647_v22 = vpack.c.bf16 %v629_v13, %v627_v50  ;;  %v399_v63 = vmul.f32 %v1642_v30, %v362_v26 }
 0x140   :  { %v1047_v11 = vmax.f32 %v1007_v5, 0.0  ;;  %v172_v45 = vmul.f32 %v1624_v23, %v138_v7  ;;  %v173_v43 = vmul.f32 %v1626_v24, %v138_v7  ;;  %v430_v5 = vadd.f32 %v398_v59, %v300_v14 }
 0x141   :  { %886 = vmatmul.bf16.gmra.mxu0 %v646_v8  ;;  %935 = vmatmul.bf16.gmra.mxu1 %v647_v22  ;;  %v1048_v0 = vmax.f32 %v912_v6, 0.0  ;;  %v431_v7 = vadd.f32 %v399_v63, %v301_v55 }
 0x142   :  { %984 = vmatmul.bf16.gmra.mxu2 %v646_v8  ;;  %1033 = vmatmul.bf16.gmra.mxu3 %v647_v22  ;;  %v1900_v10 = vpack.c.bf16 %v1047_v11, %v1045_v16 }
 0x143   :  { %v960_v17 = vpop.f32.mrf.mxu2  ;;  %v1009_v27 = vpop.f32.mrf.mxu3 }
 0x144   :  { %v961_v9 = vadd.f32 %v960_v17, %v1879_v25  ;;  %v864_v28 = vpop.f32.mrf.mxu0  ;;  %v913_v1 = vpop.f32.mrf.mxu1 }
 0x145   :  { %v865_v31 = vadd.f32 %v864_v28, %v1871_v15 }
 0x146   :  { %v1010_v18 = vadd.f32 %v1009_v27, %v961_v9 }
 0x147   :  { %v914_v35 = vadd.f32 %v913_v1, %v865_v31 }
 0x148   :  { %v236_v46 = vpop.permute.xlu1 %235  ;;  %v1049_v4 = vmax.f32 %v1010_v18, 0.0 }
 0x149   :  { %v1050_v56 = vmax.f32 %v914_v35, 0.0  ;;  %v270_v41 = vmul.f32 %v1620_v20, %v236_v46  ;;  %v271_v36 = vmul.f32 %v1622_v21, %v236_v46 }
 0x14b   :  { %v302_v58 = vadd.f32 %v270_v41, %v172_v45  ;;  %v303_v23 = vadd.f32 %v271_v36, %v173_v43  ;;  %v962_v42 = vpop.f32.mrf.mxu2  ;;  %v1011_v48 = vpop.f32.mrf.mxu3  ;;  %v1915_v2 = vpack.c.bf16 %v1050_v56, %v1048_v0 }
 0x14c   :  { %v963_v51 = vadd.f32 %v962_v42, %v1879_v25  ;;  %v867_v20 = vpop.f32.mrf.mxu0  ;;  %v916_v32 = vpop.f32.mrf.mxu1 }
 0x14d   :  { %v432_v21 = vadd.f32 %v400_v53, %v302_v58  ;;  %v433_v37 = vadd.f32 %v401_v44, %v303_v23  ;;  %v868_v24 = vadd.f32 %v867_v20, %v1871_v15 }
 0x14e   :  { %v1012_v60 = vadd.f32 %v1011_v48, %v963_v51 }
 0x14f   :  { %v562_v61 = vadd.f32 %v530_v49, %v432_v21  ;;  %v917_v3 = vadd.f32 %v916_v32, %v868_v24  ;;  %v563_v13 = vadd.f32 %v531_v52, %v433_v37 }
 0x150   :  { %v1051_v50 = vmax.f32 %v1012_v60, 0.0 }
 0x151   :  { %v492_v6 = vpop.permute.xlu1 %491  ;;  %v600_v17 = vadd.f32 %v1677_v54, %v562_v61  ;;  %v601_v28 = vadd.f32 %v1679_v12, %v563_v13  ;;  %v1052_v43 = vmax.f32 %v917_v3, 0.0 }
 0x152   :  { %v528_v8 = vmul.f32 %v1644_v33, %v492_v6  ;;  %v529_v29 = vmul.f32 %v1646_v34, %v492_v6  ;;  %v1924_v22 = vpack.c.bf16 %v1051_v50, %v1049_v4 }
 0x153   :  { %v965_v16 = vpop.f32.mrf.mxu2  ;;  %v1014_v11 = vpop.f32.mrf.mxu3  ;;  %v632_v39 = vmax.f32 %v600_v17, 0.0  ;;  %v633_v45 = vmax.f32 %v601_v28, 0.0 }
 0x154   :  { %v560_v30 = vadd.f32 %v528_v8, %v430_v5  ;;  %v561_v26 = vadd.f32 %v529_v29, %v431_v7  ;;  %v966_v27 = vadd.f32 %v965_v16, %v1879_v25  ;;  %v869_v9 = vpop.f32.mrf.mxu0  ;;  %v918_v40 = vpop.f32.mrf.mxu1 }
 0x155   :  { %v870_v1 = vadd.f32 %v869_v9, %v1871_v15 }
 0x156   :  { %v1015_v31 = vadd.f32 %v1014_v11, %v966_v27  ;;  %v598_v33 = vadd.f32 %v1677_v54, %v560_v30  ;;  %v599_v34 = vadd.f32 %v1679_v12, %v561_v26 }
 0x157   :  { %v919_v18 = vadd.f32 %v918_v40, %v870_v1 }
 0x158   :  { %v630_v38 = vmax.f32 %v598_v33, 0.0  ;;  %v631_v35 = vmax.f32 %v599_v34, 0.0  ;;  %v1053_v12 = vmax.f32 %v1015_v31, 0.0 }
 0x159   :  { %v1054_v46 = vmax.f32 %v919_v18, 0.0 }
 0x15a   :  { %v648_v53 = vpack.c.bf16 %v632_v39, %v630_v38  ;;  %v649_v44 = vpack.c.bf16 %v633_v45, %v631_v35 }
 0x15b   :  { %v967_v62 = vpop.f32.mrf.mxu2  ;;  %v1932_v0 = vpack.c.bf16 %v1054_v46, %v1052_v43  ;;  %v1016_v41 = vpop.f32.mrf.mxu3 }
 0x15c   :  { %v968_v56 = vadd.f32 %v967_v62, %v1879_v25  ;;  %891 = vmatmul.bf16.gmra.mxu0 %v648_v53  ;;  %940 = vmatmul.bf16.gmra.mxu1 %v649_v44 }
 0x15d   :  { %989 = vmatmul.bf16.gmra.mxu2 %v648_v53  ;;  %1038 = vmatmul.bf16.gmra.mxu3 %v649_v44 }
 0x15e   :  { %v1017_v54 = vadd.f32 %v1016_v41, %v968_v56 }
 0x160   :  { %v1055_v36 = vmax.f32 %v1017_v54, 0.0 }
 0x162   :  { %v1935_v47 = vpack.c.bf16 %v1055_v36, %v1053_v12 }
 0x165   :  { %v872_v57 = vpop.f32.mrf.mxu0  ;;  %v921_v58 = vpop.f32.mrf.mxu1 }
 0x166   :  { %v873_v23 = vadd.f32 %v872_v57, %v1871_v15 }
 0x168   :  { %v922_v42 = vadd.f32 %v921_v58, %v873_v23 }
 0x16a   :  { %v1056_v21 = vmax.f32 %v922_v42, 0.0 }
 0x16c   :  { %v970_v48 = vpop.f32.mrf.mxu2  ;;  %v1019_v49 = vpop.f32.mrf.mxu3 }
 0x16d   :  { %v971_v14 = vadd.f32 %v970_v48, %v1879_v25  ;;  %v874_v51 = vpop.f32.mrf.mxu0  ;;  %v923_v32 = vpop.f32.mrf.mxu1 }
 0x16e   :  { %v875_v52 = vadd.f32 %v874_v51, %v1871_v15 }
 0x16f   :  { %v1020_v20 = vadd.f32 %v1019_v49, %v971_v14 }
 0x170   :  { %v924_v59 = vadd.f32 %v923_v32, %v875_v52 }
 0x171   :  { %v1057_v3 = vmax.f32 %v1020_v20, 0.0 }
 0x172   :  { %v1058_v37 = vmax.f32 %v924_v59, 0.0 }
 0x174   :  { %v972_v24 = vpop.f32.mrf.mxu2  ;;  %v1940_v55 = vpack.c.bf16 %v1058_v37, %v1056_v21  ;;  %v1021_v60 = vpop.f32.mrf.mxu3 }
 0x175   :  { %v973_v63 = vadd.f32 %v972_v24, %v1879_v25 }
 0x177   :  { %v1022_v61 = vadd.f32 %v1021_v60, %v973_v63 }
 0x179   :  { %v1059_v4 = vmax.f32 %v1022_v61, 0.0 }
 0x17b   :  { %v1943_v50 = vpack.c.bf16 %v1059_v4, %v1057_v3 }
 0x187   :  { %v877_v13 = vpop.f32.mrf.mxu0  ;;  %v926_v5 = vpop.f32.mrf.mxu1 }
 0x188   :  { %v878_v6 = vadd.f32 %v877_v13, %v1871_v15 }
 0x18a   :  { %v927_v7 = vadd.f32 %v926_v5, %v878_v6 }
 0x18c   :  { %v1060_v9 = vmax.f32 %v927_v7, 0.0 }
 0x18e   :  { %v975_v8 = vpop.f32.mrf.mxu2  ;;  %v1024_v29 = vpop.f32.mrf.mxu3 }
 0x18f   :  { %v976_v16 = vadd.f32 %v975_v8, %v1879_v25  ;;  %v879_v11 = vpop.f32.mrf.mxu0  ;;  %v928_v26 = vpop.f32.mrf.mxu1 }
 0x190   :  { %v880_v17 = vadd.f32 %v879_v11, %v1871_v15 }
 0x191   :  { %v1025_v30 = vadd.f32 %v1024_v29, %v976_v16 }
 0x192   :  { %v929_v27 = vadd.f32 %v928_v26, %v880_v17 }
 0x193   :  { %v1061_v18 = vmax.f32 %v1025_v30, 0.0 }
 0x194   :  { %v1062_v28 = vmax.f32 %v929_v27, 0.0 }
 0x196   :  { %v977_v1 = vpop.f32.mrf.mxu2  ;;  %v1948_v31 = vpack.c.bf16 %v1062_v28, %v1060_v9  ;;  %v1026_v33 = vpop.f32.mrf.mxu3 }
 0x197   :  { %v978_v40 = vadd.f32 %v977_v1, %v1879_v25 }
 0x199   :  { %v1027_v34 = vadd.f32 %v1026_v33, %v978_v40 }
 0x19b   :  { %v1063_v38 = vmax.f32 %v1027_v34, 0.0 }
 0x19d   :  { %v1951_v39 = vpack.c.bf16 %v1063_v38, %v1061_v18 }
 0x1a2   :  { %v882_v35 = vpop.f32.mrf.mxu0  ;;  %v931_v45 = vpop.f32.mrf.mxu1 }
 0x1a3   :  { %v883_v28 = vadd.f32 %v882_v35, %v1871_v15 }
 0x1a9   :  { %v980_v43 = vpop.f32.mrf.mxu2  ;;  %v1029_v46 = vpop.f32.mrf.mxu3 }
 0x1aa   :  { %v884_v53 = vpop.f32.mrf.mxu0  ;;  %v933_v44 = vpop.f32.mrf.mxu1 }
 0x1ab   :  { %v885_v17 = vadd.f32 %v884_v53, %v1871_v15 }
 0x1ad   :  { %v934_v34 = vadd.f32 %v933_v44, %v885_v17 }
 0x1af   :  { %v1066_v53 = vmax.f32 %v934_v34, 0.0 }
 0x1b1   :  { %v982_v62 = vpop.f32.mrf.mxu2  ;;  %v1031_v56 = vpop.f32.mrf.mxu3 }
 0x1be   :  { %v887_v41 = vpop.f32.mrf.mxu0  ;;  %v936_v54 = vpop.f32.mrf.mxu1 }
 0x1bf   :  { %v888_v60 = vadd.f32 %v887_v41, %v1871_v15  ;;  %v932_v41 = vadd.f32 %v931_v45, %v883_v28  ;;  %v1126_v45 = vld [vmem:[%s1996_s6] sm:$0x1] }
 0x1c0   :  { %1129 = vperm.xlu2 %1409, %v1126_v45  }
 0x1c1   :  { %v937_v8 = vadd.f32 %v936_v54, %v888_v60  ;;  %v983_v54 = vadd.f32 %v982_v62, %v1879_v25 }
 0x1c3   :  { %v1068_v1 = vmax.f32 %v937_v8, 0.0 }
 0x1c5   :  { %v985_v12 = vpop.f32.mrf.mxu2  ;;  %v1034_v36 = vpop.f32.mrf.mxu3 }
 0x1c6   :  { %v889_v57 = vpop.f32.mrf.mxu0  ;;  %v938_v58 = vpop.f32.mrf.mxu1  ;;  %v986_v26 = vadd.f32 %v985_v12, %v1879_v25 }
 0x1c7   :  { %v890_v37 = vadd.f32 %v889_v57, %v1871_v15 }
 0x1c8   :  { %v1035_v38 = vadd.f32 %v1034_v36, %v986_v26 }
 0x1c9   :  { %v939_v4 = vadd.f32 %v938_v58, %v890_v37  ;;  %v981_v58 = vadd.f32 %v980_v43, %v1879_v25 }
 0x1ca   :  { %v1069_v12 = vmax.f32 %v1035_v38, 0.0 }
 0x1cb   :  { %v1070_v30 = vmax.f32 %v939_v4, 0.0  ;;  %v1030_v35 = vadd.f32 %v1029_v46, %v981_v58 }
 0x1cd   :  { %v987_v23 = vpop.f32.mrf.mxu2  ;;  %v1036_v42 = vpop.f32.mrf.mxu3  ;;  %v1089_v18 = vpack.c.bf16 %v1070_v30, %v1068_v1 }
 0x1ce   :  { %v988_v16 = vadd.f32 %v987_v23, %v1879_v25  ;;  %v1064_v23 = vmax.f32 %v932_v41, 0.0 }
 0x1d0   :  { %v1037_v40 = vadd.f32 %v1036_v42, %v988_v16  ;;  %v1065_v42 = vmax.f32 %v1030_v35, 0.0 }
 0x1d2   :  { %v1071_v57 = vmax.f32 %v1037_v40, 0.0 }
 0x1d9   :  { %v892_v48 = vpop.f32.mrf.mxu0  ;;  %v941_v49 = vpop.f32.mrf.mxu1 }
 0x1da   :  { %v893_v14 = vadd.f32 %v892_v48, %v1871_v15  ;;  %v1032_v48 = vadd.f32 %v1031_v56, %v983_v54 }
 0x1dc   :  { %v942_v32 = vadd.f32 %v941_v49, %v893_v14  ;;  %v1090_v49 = vpack.c.bf16 %v1071_v57, %v1069_v12  ;;  %v1067_v44 = vmax.f32 %v1032_v48, 0.0 }
 0x1de   :  { %v1072_v61 = vmax.f32 %v942_v32, 0.0  ;;  %v1088_v36 = vpack.c.bf16 %v1067_v44, %v1065_v42 }
 0x1e0   :  { %v990_v51 = vpop.f32.mrf.mxu2  ;;  %v1039_v52 = vpop.f32.mrf.mxu3 }
 0x1e1   :  { %v894_v20 = vpop.f32.mrf.mxu0  ;;  %v943_v21 = vpop.f32.mrf.mxu1  ;;  %v991_v63 = vadd.f32 %v990_v51, %v1879_v25 }
 0x1e2   :  { %v895_v59 = vadd.f32 %v894_v20, %v1871_v15  ;;  %v1087_v15 = vpack.c.bf16 %v1066_v53, %v1064_v23 }
 0x1e3   :  { %v1040_v6 = vadd.f32 %v1039_v52, %v991_v63 }
 0x1e4   :  { %v944_v24 = vadd.f32 %v943_v21, %v895_v59 }
 0x1e5   :  { %v1073_v27 = vmax.f32 %v1040_v6, 0.0 }
 0x1e6   :  { %v1074_v3 = vmax.f32 %v944_v24, 0.0 }
 0x1e8   :  { %v992_v13 = vpop.f32.mrf.mxu2  ;;  %v1091_v5 = vpack.c.bf16 %v1074_v3, %v1072_v61  ;;  %v1041_v29 = vpop.f32.mrf.mxu3 }
 0x1e9   :  { %v993_v7 = vadd.f32 %v992_v13, %v1879_v25  ;;  %v1133_v25 = vld [vmem:[%s1996_s6 + $0x1] sm:$0x1] }
 0x1ea   :  { %1100 = vmatpush.bf16.xpose.msrb.mxu0 %v1091_v5  ;;  %1136 = vperm.xlu1 %1408, %v1133_v25  }
 0x1eb   :  { %v1042_v11 = vadd.f32 %v1041_v29, %v993_v7 }
 0x1ed   :  { %v1075_v9 = vmax.f32 %v1042_v11, 0.0 }
 0x1ef   :  { %v1092_v33 = vpack.c.bf16 %v1075_v9, %v1073_v27 }
 0x1f1   :  { %1113 = vmatpush.bf16.xpose.msrb.mxu1 %v1092_v33 }
 0x1f2   :  { %1101 = vmatpush.bf16.xpose.msrb.mxu0 %v1089_v18 }
 0x1f9   :  { %1114 = vmatpush.bf16.xpose.msrb.mxu1 %v1090_v49 }
 0x1fa   :  { %1102 = vmatpush.bf16.xpose.msrb.mxu0 %v1087_v15 }
 0x201   :  { %1115 = vmatpush.bf16.xpose.msrb.mxu1 %v1088_v36 }
 0x202   :  { %1103 = vmatpush.bf16.xpose.msrb.mxu0 %v1948_v31 }
 0x209   :  { %1116 = vmatpush.bf16.xpose.msrb.mxu1 %v1951_v39 }
 0x20a   :  { %1104 = vmatpush.bf16.xpose.msrb.mxu0 %v1940_v55  ;;  %v1076_v55 = vld [vmem:[%s1995_s5] sm:$0xff] }
 0x20b   :  { %v1094_v31 = vunpack.c.l.b16 %v1076_v55  ;;  %v1095_v43 = vunpack.c.h.b16 %v1076_v55 }
 0x20d   :  { %v1096_v39 = vpack.c.b16 %v1094_v31, %v1094_v31 }
 0x211   :  { %1117 = vmatpush.bf16.xpose.msrb.mxu1 %v1943_v50 }
 0x212   :  { %1105 = vmatpush.bf16.xpose.msrb.mxu0 %v1932_v0  ;;  %v1097_v0 = vpack.c.b16 %v1095_v43, %v1095_v43 }
 0x219   :  { %1118 = vmatpush.bf16.xpose.msrb.mxu1 %v1935_v47 }
 0x21a   :  { %1106 = vmatpush.bf16.xpose.msrb.mxu0 %v1915_v2  ;;  %v1130_v14 = vpop.permute.xlu2 %1129 }
 0x221   :  { %1119 = vmatpush.bf16.xpose.msrb.mxu1 %v1924_v22 }
 0x222   :  { %1107 = vmatpush.bf16.xpose.msrb.mxu0 %v1896_v19 }
 0x229   :  { %1120 = vmatpush.bf16.xpose.msrb.mxu1 %v1900_v10  ;;  %1108 = vmatmul.bf16.vlgmr.msrb.gmra.mxu0 %v1096_v39 }
 0x230   :  { %1121 = vmatmul.bf16.vlgmr.msrb.gmra.mxu1 %v1097_v0 }
 0x25c   :  { %v1137_v47 = vpop.permute.xlu1 %1136 }
 0x25d   :  { %v1138_v46 = vrot.slane %v1137_v47, 7 }
 0x2a6   :  { %v1109_v50 = vpop.f32.mrf.mxu0 }
 0x2ad   :  { %v1122_v2 = vpop.f32.mrf.mxu1 }
 0x2ae   :  { %v1123_v62 = vadd.f32 %v1122_v2, %v1109_v50  ;;  %v1111_v56 = vpop.f32.mrf.mxu0 }
 0x2b0   :  { %v1140_v51 = vadd.f32 %v1138_v46, %v1123_v62  ;;  %v1132_v52 = vadd.f32 %v1130_v14, %v1123_v62 }
 0x2b2   :  { %v1142_v22 = vrot.slane %v1140_v51, 1 }
 0x2b4   :  { %v1144_v20 = vmax.f32 %v1132_v52, %v1142_v22 }
 0x2b5   :  { %v1124_v32 = vpop.f32.mrf.mxu1 }
 0x2b6   :  { %v1145_v19 = vsub.f32 %v1132_v52, %v1144_v20  ;;  %v1149_v59 = vrot.slane %v1144_v20, 7 }
 0x2b8   :  { %v1151_v21 = vsub.f32 %v1140_v51, %v1149_v59  ;;  %v1146_v37 = vmul.f32 1.442695, %v1145_v19 }
 0x2ba   :  { %v1152_v10 = vmul.f32 1.442695, %v1151_v21 }
 0x2bc   :  { %1411 = vpow2.f32 %v1152_v10 }
 0x2bd   :  { %1413 = vpow2.f32 %v1146_v37 }
 0x2c2   :  { %v1412_v24 = vpop.eup %1411 }
 0x2c3   :  { %v1155_v63 = vrot.slane %v1412_v24, 1  ;;  %v1414_v60 = vpop.eup %1413 }
 0x2c5   :  { %v1157_v61 = vadd.f32 %v1414_v60, %v1155_v63 }
 0x2c7   :  { %1415 = vrcp.f32 %v1157_v61  ;;  %v1169_v5 = vand.u32 2147483648, %v1157_v61  ;;  %v1167_v7 = vand.u32 2147483647, %v1157_v61  ;;  %vm1163_vm1 = vweird.f32 %v1157_v61 }
 0x2c9   :  { %v1170_v29 = vor.u32 1.1754944e-38, %v1169_v5  ;;  %vm1168_vm3 = vcmp.eq.f32.partialorder %v1167_v7, 8.507059e+37 }
 0x2cd   :  { %v1416_v3 = vpop.eup %1415 }
 0x2ce   :  { %v1159_v4 = vmul.f32 %v1416_v3, %v1157_v61  ;;  %vm1164_vm0 = vweird.f32 %v1416_v3 }
 0x2cf   :  { %vm1165_vm2 = vmor %vm1163_vm1, %vm1164_vm0 }
 0x2d0   :  { %v1160_v13 = vsub.f32 1.0, %v1159_v4 }
 0x2d2   :  { %v1161_v6 = vmul.f32 %v1416_v3, %v1160_v13 }
 0x2d4   :  { %v1162_v8 = vadd.f32 %v1416_v3, %v1161_v6 }
 0x2d6   :  { %v1166_v16 = vsel %vm1165_vm2, %v1416_v3, %v1162_v8 }
 0x2d7   :  { %v1171_v11 = vsel %vm1168_vm3, %v1170_v29, %v1166_v16 }
 0x2d8   :  { %v1172_v17 = vmul.f32 %v1414_v60, %v1171_v11  ;;  %v1175_v30 = vrot.slane %v1171_v11, 7 }
 0x2da   :  { %1173 = vst [vmem:[%s1997_s7] sm:$0x1] %v1172_v17  ;;  %v1177_v26 = vmul.f32 %v1412_v24, %v1175_v30 }
 0x2dc   :  { %1178 = vst [vmem:[%s1997_s7] sm:$0x2] %v1177_v26 }
 0x2dd   :  { %1183 = vsyncpa [#allocation3], 1 }

</bundles_post_ra>
